<compile_context>
chip_gen: v6e
topology: v6e:2x2x1
jax: 0.10.0
libtpu: 0.0.40
codegen_flags: <defaults>
</compile_context>

<pallas_src>
import jax
import jax.numpy as jnp
from jax.experimental import pallas as pl
from jax.experimental.pallas import tpu as pltpu

CONTROL_POINTS = 25
GRID_SIZE = 20
LANE = 128


def _round_up(x, m):
    return ((x + m - 1) // m) * m


# ----------------------------------------------------------------------------- grid-gen body
def _grid_gen_body(base_ref, src_ref, src_t_ref, tgt_t_ref, grid_ref):
    """TPS transformation-grid generation, lane-dense along Gp (padded grid)."""
    base = base_ref[...]                                             # (2, Gp)
    gx = base[0:1, :]                                                # (1, Gp)
    gy = base[1:2, :]                                                # (1, Gp)
    B = src_ref.shape[0]
    K = src_ref.shape[1]
    ones_row = jnp.ones((1, K), dtype=jnp.float32)

    for b in range(B):                                               # trace-time unroll (B small)
        s = src_ref[b]                                               # (K, 2)
        sx = s[:, 0:1]                                               # (K, 1)
        sy = s[:, 1:2]                                               # (K, 1)

        # Direct-difference distances (pure VPU broadcast, no MXU expansion).
        dx = gx - sx                                                 # (K, Gp)
        dy = gy - sy                                                 # (K, Gp)
        dist = jnp.sqrt(dx * dx + dy * dy)                           # (K, Gp)

        # softmax(-dist / 0.1) over K, no max-subtraction needed:
        # logits in [-10*sqrt(8), 0] -> exp in [~5e-13, 1], exact in f32.
        e = jnp.exp(dist * (-10.0))                                  # (K, Gp)

        # Fold the three K-reductions into one tiny MXU matmul:
        #   rows = [ones; dispx; dispy]  -> (3, K);  sums = rows @ e -> (3, Gp)
        disp_t = tgt_t_ref[b] - src_t_ref[b]                         # (2, K)
        red = jnp.concatenate([ones_row, disp_t], axis=0)            # (3, K)
        sums = jnp.dot(red, e, preferred_element_type=jnp.float32)   # (3, Gp)

        inv = 1.0 / sums[0:1, :]                                     # exact, once per plane
        grid_ref[b] = base + sums[1:3, :] * inv                      # single (2, Gp) store


# ----------------------------------------------------------------------------- kernels
def _tps_fused_kernel(feats_ref, base_ref, src_ref, src_t_ref, tgt_t_ref,
                      w1_hbm, b1_hbm, w2_hbm, b2_hbm, w3_hbm, b3_hbm,
                      coeff_ref, grid_ref,
                      w1_v, b1_v, w2_v, b2_v, w3_v, b3_v, sems):
    # Kick off all weight/bias DMAs immediately; they land while grid-gen runs.
    copies = []
    for idx, (hbm, vmem) in enumerate([(w1_hbm, w1_v), (b1_hbm, b1_v),
                                       (w2_hbm, w2_v), (b2_hbm, b2_v),
                                       (w3_hbm, w3_v), (b3_hbm, b3_v)]):
        cp = pltpu.make_async_copy(hbm, vmem, sems.at[idx])
        cp.start()
        copies.append(cp)

    # ---------------- TPS grid generation (weight independent) ----------------
    _grid_gen_body(base_ref, src_ref, src_t_ref, tgt_t_ref, grid_ref)

    # ---------------- tps_predictor MLP (DMAs are hidden by the above) --------
    x = feats_ref[...]                                               # (B, 4K)
    copies[0].wait()
    copies[1].wait()
    h1 = jnp.maximum(
        jnp.dot(x, w1_v[...], preferred_element_type=jnp.float32) + b1_v[...], 0.0)
    copies[2].wait()
    copies[3].wait()
    h2 = jnp.maximum(
        jnp.dot(h1, w2_v[...], preferred_element_type=jnp.float32) + b2_v[...], 0.0)
    copies[4].wait()
    copies[5].wait()
    coeff_ref[...] = (
        jnp.dot(h2, w3_v[...], preferred_element_type=jnp.float32) + b3_v[...])


def _tps_grid_only_kernel(base_ref, src_ref, src_t_ref, tgt_t_ref, grid_ref):
    _grid_gen_body(base_ref, src_ref, src_t_ref, tgt_t_ref, grid_ref)


# ----------------------------------------------------------------------------- wrappers
def _full_spec(shape):
    return pl.BlockSpec(shape, lambda i, n=len(shape): (0,) * n)


def _base_grid_rows(grid_size, padded_cols):
    # Row 0 = x coords, row 1 = y coords (torch meshgrid 'ij', stack [x, y]).
    ys = jnp.linspace(-1.0, 1.0, grid_size)
    xs = jnp.linspace(-1.0, 1.0, grid_size)
    yy, xx = jnp.meshgrid(ys, xs, indexing="ij")
    rows = jnp.stack([xx.reshape(-1), yy.reshape(-1)], axis=0).astype(jnp.float32)  # (2, G)
    return jnp.pad(rows, ((0, 0), (0, padded_cols - rows.shape[1])))                # (2, Gp)


def tps_transform_network_forward(source_points, target_points, params,
                                  grid_size=GRID_SIZE, control_points=CONTROL_POINTS,
                                  compute_coefficients=True):
    """Forward pass of TPSTransformNetwork.

    With compute_coefficients=True (default, faithful to torch) returns
    (transformation_grid, tps_coefficients); with False it skips the MLP (whose
    output the torch module discards anyway) and returns only the grid.
    """
    B, K = source_points.shape[0], source_points.shape[1]
    G = grid_size * grid_size
    Gp = _round_up(G, LANE)                                           # 400 -> 512 lanes
    w1, b1, w2, b2, w3, b3 = params

    base = _base_grid_rows(grid_size, Gp)                             # (2, Gp)
    # Layout plumbing (tiny): transposed points so the kernel can build the
    # (3, K) reduction matrix without an in-kernel transpose.
    src_t = jnp.transpose(source_points, (0, 2, 1))                   # (B, 2, K)
    tgt_t = jnp.transpose(target_points, (0, 2, 1))                   # (B, 2, K)

    # Cost model (grid-gen part).
    grid_flops = B * (8 * K * Gp + 6 * Gp)
    grid_transc = 2 * B * K * Gp                                      # exp + sqrt
    io_bytes = 4 * int(base.size + 3 * source_points.size + B * 2 * Gp)

    if compute_coefficients:
        feats = jnp.concatenate(
            [source_points.reshape(B, -1), target_points.reshape(B, -1)], axis=1)  # (B, 4K)
        in_f, hid1, hid2, out_f = w1.shape[0], w1.shape[1], w2.shape[1], w3.shape[1]
        param_bytes = 4 * int(w1.size + b1.size + w2.size + b2.size + w3.size + b3.size)
        mlp_flops = 2 * B * (in_f * hid1 + hid1 * hid2 + hid2 * out_f)

        coeff_flat, grid_slab = pl.pallas_call(
            _tps_fused_kernel,
            out_shape=(jax.ShapeDtypeStruct((B, out_f), jnp.float32),
                       jax.ShapeDtypeStruct((B, 2, Gp), jnp.float32)),
            grid=(1,),
            in_specs=[_full_spec(feats.shape),
                      _full_spec(base.shape),
                      _full_spec(source_points.shape),
                      _full_spec(src_t.shape),
                      _full_spec(tgt_t.shape),
                      # Weights stay in HBM; kernel overlaps their DMA with grid-gen.
                      pl.BlockSpec(memory_space=pl.ANY),
                      pl.BlockSpec(memory_space=pl.ANY),
                      pl.BlockSpec(memory_space=pl.ANY),
                      pl.BlockSpec(memory_space=pl.ANY),
                      pl.BlockSpec(memory_space=pl.ANY),
                      pl.BlockSpec(memory_space=pl.ANY)],
            out_specs=[_full_spec((B, out_f)),
                       _full_spec((B, 2, Gp))],
            scratch_shapes=[pltpu.VMEM(w1.shape, jnp.float32),
                            pltpu.VMEM(b1.shape, jnp.float32),
                            pltpu.VMEM(w2.shape, jnp.float32),
                            pltpu.VMEM(b2.shape, jnp.float32),
                            pltpu.VMEM(w3.shape, jnp.float32),
                            pltpu.VMEM(b3.shape, jnp.float32),
                            pltpu.SemaphoreType.DMA((6,))],
            compiler_params=pltpu.CompilerParams(
                dimension_semantics=("arbitrary",)),
            cost_estimate=pl.CostEstimate(
                flops=mlp_flops + grid_flops,
                transcendentals=grid_transc,
                bytes_accessed=param_bytes + io_bytes + 4 * int(feats.size + B * out_f)),
        )(feats, base, source_points, src_t, tgt_t, w1, b1, w2, b2, w3, b3)

        tps_coefficients = coeff_flat.reshape(B, control_points, 2)
    else:
        grid_slab = pl.pallas_call(
            _tps_grid_only_kernel,
            out_shape=jax.ShapeDtypeStruct((B, 2, Gp), jnp.float32),
            grid=(1,),
            in_specs=[_full_spec(base.shape),
                      _full_spec(source_points.shape),
                      _full_spec(src_t.shape),
                      _full_spec(tgt_t.shape)],
            out_specs=_full_spec((B, 2, Gp)),
            compiler_params=pltpu.CompilerParams(
                dimension_semantics=("arbitrary",)),
            cost_estimate=pl.CostEstimate(
                flops=grid_flops, transcendentals=grid_transc, bytes_accessed=io_bytes),
        )(base, source_points, src_t, tgt_t)
        tps_coefficients = None

    # Lane-dense (B, 2, Gp) -> slice off pad lanes -> torch layout (B, H, W, 2).
    transformation_grid = (grid_slab[:, :, :G]
                           .transpose(0, 2, 1)
                           .reshape(B, grid_size, grid_size, 2))
    if compute_coefficients:
        return transformation_grid, tps_coefficients
    return transformation_grid


# ----------------------------------------------------------------------------- params + reference
def init_params(key, control_points=CONTROL_POINTS):
    dims = [(control_points * 4, 512), (512, 256), (256, control_points * 2)]
    params = []
    for fan_in, fan_out in dims:
        bound = 1.0 / (float(fan_in) ** 0.5)
        key, kw, kb = jax.random.split(key, 3)
        w = jax.random.uniform(kw, (fan_in, fan_out), jnp.float32, -bound, bound)
        b = jax.random.uniform(kb, (1, fan_out), jnp.float32, -bound, bound)
        params += [w, b]
    return tuple(params)


def _reference(source_points, target_points, params, grid_size=GRID_SIZE,
               control_points=CONTROL_POINTS):
    """Pure-JAX reference matching the torch module (inference mode)."""
    B = source_points.shape[0]
    w1, b1, w2, b2, w3, b3 = params
    x = jnp.concatenate([source_points.reshape(B, -1), target_points.reshape(B, -1)], axis=1)
    h1 = jnp.maximum(x @ w1 + b1, 0.0)
    h2 = jnp.maximum(h1 @ w2 + b2, 0.0)
    coeff = (h2 @ w3 + b3).reshape(B, control_points, 2)

    ys = jnp.linspace(-1.0, 1.0, grid_size)
    xs = jnp.linspace(-1.0, 1.0, grid_size)
    yy, xx = jnp.meshgrid(ys, xs, indexing="ij")
    base = jnp.stack([xx, yy], axis=-1).reshape(-1, 2).astype(jnp.float32)        # (G, 2)

    diff = base[None, :, None, :] - source_points[:, None, :, :]                  # (B, G, K, 2)
    dist = jnp.sqrt(jnp.sum(diff * diff, axis=-1))                                # (B, G, K)
    weights = jax.nn.softmax(-dist / 0.1, axis=-1)
    disp = target_points - source_points
    interp = jnp.einsum("bgk,bkd->bgd", weights, disp)
    grid = base[None] + interp
    return grid.reshape(B, grid_size, grid_size, 2), coeff


# ----------------------------------------------------------------------------- main
if __name__ == "__main__":
    key = jax.random.PRNGKey(0)
    kp, ks, kt = jax.random.split(key, 3)
    params = init_params(kp)

    B = 2
    src = jax.random.uniform(ks, (B, CONTROL_POINTS, 2), jnp.float32, -1.0, 1.0)
    tgt = jax.random.uniform(kt, (B, CONTROL_POINTS, 2), jnp.float32, -1.0, 1.0)

    # Default path: faithful torch forward (MLP included, DMA overlapped).
    fwd = jax.jit(lambda s, t: tps_transform_network_forward(s, t, params))
    grid_out, coeff = fwd(src, tgt)
    jax.block_until_ready((grid_out, coeff))

    # Grid-only path (torch discards the coefficients; this drops the weight DMA).
    fwd_grid_only = jax.jit(
        lambda s, t: tps_transform_network_forward(s, t, params, compute_coefficients=False))
    grid_only = fwd_grid_only(src, tgt)
    jax.block_until_ready(grid_only)

    ref_grid, ref_coeff = _reference(src, tgt, params)
    assert grid_out.shape == (B, GRID_SIZE, GRID_SIZE, 2), grid_out.shape
    assert coeff.shape == (B, CONTROL_POINTS, 2), coeff.shape
    assert jnp.allclose(grid_out, ref_grid, atol=1e-5, rtol=1e-5)
    assert jnp.allclose(coeff, ref_coeff, atol=1e-4, rtol=1e-4)
    assert jnp.allclose(grid_only, ref_grid, atol=1e-5, rtol=1e-5)
    print("KERNEL_OK")
</pallas_src>

<mosaic_0001>
module attributes {stable_mosaic.version = 11 : i64} {
  func.func @_tps_fused_kernel(%arg0: i32, %arg1: memref<2x100xf32, #tpu.memory_space<vmem>>, %arg2: memref<2x512xf32, #tpu.memory_space<vmem>>, %arg3: memref<2x25x2xf32, #tpu.memory_space<vmem>>, %arg4: memref<2x2x25xf32, #tpu.memory_space<vmem>>, %arg5: memref<2x2x25xf32, #tpu.memory_space<vmem>>, %arg6: memref<100x512xf32, #tpu.memory_space<any>>, %arg7: memref<1x512xf32, #tpu.memory_space<any>>, %arg8: memref<512x256xf32, #tpu.memory_space<any>>, %arg9: memref<1x256xf32, #tpu.memory_space<any>>, %arg10: memref<256x50xf32, #tpu.memory_space<any>>, %arg11: memref<1x50xf32, #tpu.memory_space<any>>, %arg12: memref<2x50xf32, #tpu.memory_space<vmem>>, %arg13: memref<2x2x512xf32, #tpu.memory_space<vmem>>, %arg14: memref<100x512xf32, #tpu.memory_space<vmem>>, %arg15: memref<1x512xf32, #tpu.memory_space<vmem>>, %arg16: memref<512x256xf32, #tpu.memory_space<vmem>>, %arg17: memref<1x256xf32, #tpu.memory_space<vmem>>, %arg18: memref<256x50xf32, #tpu.memory_space<vmem>>, %arg19: memref<1x50xf32, #tpu.memory_space<vmem>>, %arg20: memref<6x!tpu.dma_semaphore, #tpu.memory_space<semaphore_mem>>) attributes {dimension_semantics = [#tpu.dimension_semantics<arbitrary>], iteration_bounds = array<i64: 1>, scalar_prefetch = 0 : i64, scratch_operands = 7 : i64, tpu.core_type = #tpu.core_type<tc>, window_params = [{pipeline_mode = #tpu.pipeline_mode<synchronous>, transform_indices = @transform_0, window_bounds = array<i64: 2, 100>}, {pipeline_mode = #tpu.pipeline_mode<synchronous>, transform_indices = @transform_1, window_bounds = array<i64: 2, 512>}, {pipeline_mode = #tpu.pipeline_mode<synchronous>, transform_indices = @transform_2, window_bounds = array<i64: 2, 25, 2>}, {pipeline_mode = #tpu.pipeline_mode<synchronous>, transform_indices = @transform_3, window_bounds = array<i64: 2, 2, 25>}, {pipeline_mode = #tpu.pipeline_mode<synchronous>, transform_indices = @transform_4, window_bounds = array<i64: 2, 2, 25>}, {}, {}, {}, {}, {}, {}, {pipeline_mode = #tpu.pipeline_mode<synchronous>, transform_indices = @transform_11, window_bounds = array<i64: 2, 50>}, {pipeline_mode = #tpu.pipeline_mode<synchronous>, transform_indices = @transform_12, window_bounds = array<i64: 2, 2, 512>}]} {
    %c0_i32 = arith.constant 0 : i32
    %0 = tpu.memref_slice %arg20[%c0_i32] : memref<6x!tpu.dma_semaphore, #tpu.memory_space<semaphore_mem>> -> memref<1x!tpu.dma_semaphore, #tpu.memory_space<semaphore_mem>>
    %1 = tpu.memref_squeeze %0 : memref<1x!tpu.dma_semaphore, #tpu.memory_space<semaphore_mem>> -> memref<!tpu.dma_semaphore, #tpu.memory_space<semaphore_mem>>
    tpu.enqueue_dma source(%arg6 : memref<100x512xf32, #tpu.memory_space<any>>) target(%arg14 : memref<100x512xf32, #tpu.memory_space<vmem>>) target_semaphore(%1 : memref<!tpu.dma_semaphore, #tpu.memory_space<semaphore_mem>>)
    %c1_i32 = arith.constant 1 : i32
    %2 = tpu.memref_slice %arg20[%c1_i32] : memref<6x!tpu.dma_semaphore, #tpu.memory_space<semaphore_mem>> -> memref<1x!tpu.dma_semaphore, #tpu.memory_space<semaphore_mem>>
    %3 = tpu.memref_squeeze %2 : memref<1x!tpu.dma_semaphore, #tpu.memory_space<semaphore_mem>> -> memref<!tpu.dma_semaphore, #tpu.memory_space<semaphore_mem>>
    tpu.enqueue_dma source(%arg7 : memref<1x512xf32, #tpu.memory_space<any>>) target(%arg15 : memref<1x512xf32, #tpu.memory_space<vmem>>) target_semaphore(%3 : memref<!tpu.dma_semaphore, #tpu.memory_space<semaphore_mem>>)
    %c2_i32 = arith.constant 2 : i32
    %4 = tpu.memref_slice %arg20[%c2_i32] : memref<6x!tpu.dma_semaphore, #tpu.memory_space<semaphore_mem>> -> memref<1x!tpu.dma_semaphore, #tpu.memory_space<semaphore_mem>>
    %5 = tpu.memref_squeeze %4 : memref<1x!tpu.dma_semaphore, #tpu.memory_space<semaphore_mem>> -> memref<!tpu.dma_semaphore, #tpu.memory_space<semaphore_mem>>
    tpu.enqueue_dma source(%arg8 : memref<512x256xf32, #tpu.memory_space<any>>) target(%arg16 : memref<512x256xf32, #tpu.memory_space<vmem>>) target_semaphore(%5 : memref<!tpu.dma_semaphore, #tpu.memory_space<semaphore_mem>>)
    %c3_i32 = arith.constant 3 : i32
    %6 = tpu.memref_slice %arg20[%c3_i32] : memref<6x!tpu.dma_semaphore, #tpu.memory_space<semaphore_mem>> -> memref<1x!tpu.dma_semaphore, #tpu.memory_space<semaphore_mem>>
    %7 = tpu.memref_squeeze %6 : memref<1x!tpu.dma_semaphore, #tpu.memory_space<semaphore_mem>> -> memref<!tpu.dma_semaphore, #tpu.memory_space<semaphore_mem>>
    tpu.enqueue_dma source(%arg9 : memref<1x256xf32, #tpu.memory_space<any>>) target(%arg17 : memref<1x256xf32, #tpu.memory_space<vmem>>) target_semaphore(%7 : memref<!tpu.dma_semaphore, #tpu.memory_space<semaphore_mem>>)
    %c4_i32 = arith.constant 4 : i32
    %8 = tpu.memref_slice %arg20[%c4_i32] : memref<6x!tpu.dma_semaphore, #tpu.memory_space<semaphore_mem>> -> memref<1x!tpu.dma_semaphore, #tpu.memory_space<semaphore_mem>>
    %9 = tpu.memref_squeeze %8 : memref<1x!tpu.dma_semaphore, #tpu.memory_space<semaphore_mem>> -> memref<!tpu.dma_semaphore, #tpu.memory_space<semaphore_mem>>
    tpu.enqueue_dma source(%arg10 : memref<256x50xf32, #tpu.memory_space<any>>) target(%arg18 : memref<256x50xf32, #tpu.memory_space<vmem>>) target_semaphore(%9 : memref<!tpu.dma_semaphore, #tpu.memory_space<semaphore_mem>>)
    %c5_i32 = arith.constant 5 : i32
    %10 = tpu.memref_slice %arg20[%c5_i32] : memref<6x!tpu.dma_semaphore, #tpu.memory_space<semaphore_mem>> -> memref<1x!tpu.dma_semaphore, #tpu.memory_space<semaphore_mem>>
    %11 = tpu.memref_squeeze %10 : memref<1x!tpu.dma_semaphore, #tpu.memory_space<semaphore_mem>> -> memref<!tpu.dma_semaphore, #tpu.memory_space<semaphore_mem>>
    tpu.enqueue_dma source(%arg11 : memref<1x50xf32, #tpu.memory_space<any>>) target(%arg19 : memref<1x50xf32, #tpu.memory_space<vmem>>) target_semaphore(%11 : memref<!tpu.dma_semaphore, #tpu.memory_space<semaphore_mem>>)
    %c0 = arith.constant 0 : index
    %c0_0 = arith.constant 0 : index
    %12 = vector.load %arg2[%c0, %c0_0] : memref<2x512xf32, #tpu.memory_space<vmem>>, vector<2x512xf32>
    %13 = vector.extract_strided_slice %12 {offsets = [0, 0], sizes = [1, 512], strides = [1, 1]} : vector<2x512xf32> to vector<1x512xf32>
    %14 = vector.extract_strided_slice %12 {offsets = [1, 0], sizes = [1, 512], strides = [1, 1]} : vector<2x512xf32> to vector<1x512xf32>
    %cst = arith.constant 1.000000e+00 : f32
    %15 = vector.broadcast %cst : f32 to vector<1x25xf32>
    %c0_1 = arith.constant 0 : index
    %c0_2 = arith.constant 0 : index
    %c0_3 = arith.constant 0 : index
    %16 = vector.load %arg3[%c0_1, %c0_2, %c0_3] : memref<2x25x2xf32, #tpu.memory_space<vmem>>, vector<1x25x2xf32>
    %17 = vector.shape_cast %16 : vector<1x25x2xf32> to vector<25x2xf32>
    %18 = vector.extract_strided_slice %17 {offsets = [0, 0], sizes = [25, 1], strides = [1, 1]} : vector<25x2xf32> to vector<25x1xf32>
    %19 = vector.extract_strided_slice %17 {offsets = [0, 1], sizes = [25, 1], strides = [1, 1]} : vector<25x2xf32> to vector<25x1xf32>
    %20 = vector.broadcast %13 : vector<1x512xf32> to vector<25x512xf32>
    %21 = vector.broadcast %18 : vector<25x1xf32> to vector<25x512xf32>
    %22 = arith.subf %20, %21 : vector<25x512xf32>
    %23 = vector.broadcast %14 : vector<1x512xf32> to vector<25x512xf32>
    %24 = vector.broadcast %19 : vector<25x1xf32> to vector<25x512xf32>
    %25 = arith.subf %23, %24 : vector<25x512xf32>
    %26 = arith.mulf %22, %22 : vector<25x512xf32>
    %27 = arith.mulf %25, %25 : vector<25x512xf32>
    %28 = arith.addf %26, %27 : vector<25x512xf32>
    %29 = math.sqrt %28 : vector<25x512xf32>
    %cst_4 = arith.constant -1.000000e+01 : f32
    %30 = vector.broadcast %cst_4 : f32 to vector<25x512xf32>
    %31 = arith.mulf %29, %30 : vector<25x512xf32>
    %32 = math.exp %31 : vector<25x512xf32>
    %c0_5 = arith.constant 0 : index
    %c0_6 = arith.constant 0 : index
    %c0_7 = arith.constant 0 : index
    %33 = vector.load %arg5[%c0_5, %c0_6, %c0_7] : memref<2x2x25xf32, #tpu.memory_space<vmem>>, vector<1x2x25xf32>
    %34 = vector.shape_cast %33 : vector<1x2x25xf32> to vector<2x25xf32>
    %c0_8 = arith.constant 0 : index
    %c0_9 = arith.constant 0 : index
    %c0_10 = arith.constant 0 : index
    %35 = vector.load %arg4[%c0_8, %c0_9, %c0_10] : memref<2x2x25xf32, #tpu.memory_space<vmem>>, vector<1x2x25xf32>
    %36 = vector.shape_cast %35 : vector<1x2x25xf32> to vector<2x25xf32>
    %37 = arith.subf %34, %36 : vector<2x25xf32>
    %38 = tpu.concatenate %15, %37 in 0 : vector<1x25xf32>, vector<2x25xf32> -> vector<3x25xf32>
    %cst_11 = arith.constant dense<0.000000e+00> : vector<3x512xf32>
    %39 = tpu.matmul %38, %32, %cst_11 {dimension_numbers = #tpu.dot_dimension_numbers<[1], [0], [0], [1], [0, 0, 1, 1], [], []>} : vector<3x25xf32>, vector<25x512xf32>, vector<3x512xf32> -> vector<3x512xf32>
    %40 = vector.extract_strided_slice %39 {offsets = [0, 0], sizes = [1, 512], strides = [1, 1]} : vector<3x512xf32> to vector<1x512xf32>
    %cst_12 = arith.constant 1.000000e+00 : f32
    %41 = vector.broadcast %cst_12 : f32 to vector<1x512xf32>
    %42 = arith.divf %41, %40 : vector<1x512xf32>
    %43 = vector.extract_strided_slice %39 {offsets = [1, 0], sizes = [2, 512], strides = [1, 1]} : vector<3x512xf32> to vector<2x512xf32>
    %44 = vector.broadcast %42 : vector<1x512xf32> to vector<2x512xf32>
    %45 = arith.mulf %43, %44 : vector<2x512xf32>
    %46 = arith.addf %12, %45 : vector<2x512xf32>
    %c0_13 = arith.constant 0 : index
    %c0_14 = arith.constant 0 : index
    %c0_15 = arith.constant 0 : index
    %47 = vector.load %arg13[%c0_13, %c0_14, %c0_15] : memref<2x2x512xf32, #tpu.memory_space<vmem>>, vector<1x2x512xf32>
    %48 = vector.shape_cast %47 : vector<1x2x512xf32> to vector<2x512xf32>
    %49 = vector.shape_cast %46 : vector<2x512xf32> to vector<1x2x512xf32>
    tpu.vector_store %arg13[%c0_13, %c0_14, %c0_15], %49 {strides = array<i32>} : memref<2x2x512xf32, #tpu.memory_space<vmem>>, vector<1x2x512xf32>,
    %c1 = arith.constant 1 : index
    %c0_16 = arith.constant 0 : index
    %c0_17 = arith.constant 0 : index
    %50 = vector.load %arg3[%c1, %c0_16, %c0_17] : memref<2x25x2xf32, #tpu.memory_space<vmem>>, vector<1x25x2xf32>
    %51 = vector.shape_cast %50 : vector<1x25x2xf32> to vector<25x2xf32>
    %52 = vector.extract_strided_slice %51 {offsets = [0, 0], sizes = [25, 1], strides = [1, 1]} : vector<25x2xf32> to vector<25x1xf32>
    %53 = vector.extract_strided_slice %51 {offsets = [0, 1], sizes = [25, 1], strides = [1, 1]} : vector<25x2xf32> to vector<25x1xf32>
    %54 = vector.broadcast %13 : vector<1x512xf32> to vector<25x512xf32>
    %55 = vector.broadcast %52 : vector<25x1xf32> to vector<25x512xf32>
    %56 = arith.subf %54, %55 : vector<25x512xf32>
    %57 = vector.broadcast %14 : vector<1x512xf32> to vector<25x512xf32>
    %58 = vector.broadcast %53 : vector<25x1xf32> to vector<25x512xf32>
    %59 = arith.subf %57, %58 : vector<25x512xf32>
    %60 = arith.mulf %56, %56 : vector<25x512xf32>
    %61 = arith.mulf %59, %59 : vector<25x512xf32>
    %62 = arith.addf %60, %61 : vector<25x512xf32>
    %63 = math.sqrt %62 : vector<25x512xf32>
    %cst_18 = arith.constant -1.000000e+01 : f32
    %64 = vector.broadcast %cst_18 : f32 to vector<25x512xf32>
    %65 = arith.mulf %63, %64 : vector<25x512xf32>
    %66 = math.exp %65 : vector<25x512xf32>
    %c1_19 = arith.constant 1 : index
    %c0_20 = arith.constant 0 : index
    %c0_21 = arith.constant 0 : index
    %67 = vector.load %arg5[%c1_19, %c0_20, %c0_21] : memref<2x2x25xf32, #tpu.memory_space<vmem>>, vector<1x2x25xf32>
    %68 = vector.shape_cast %67 : vector<1x2x25xf32> to vector<2x25xf32>
    %c1_22 = arith.constant 1 : index
    %c0_23 = arith.constant 0 : index
    %c0_24 = arith.constant 0 : index
    %69 = vector.load %arg4[%c1_22, %c0_23, %c0_24] : memref<2x2x25xf32, #tpu.memory_space<vmem>>, vector<1x2x25xf32>
    %70 = vector.shape_cast %69 : vector<1x2x25xf32> to vector<2x25xf32>
    %71 = arith.subf %68, %70 : vector<2x25xf32>
    %72 = tpu.concatenate %15, %71 in 0 : vector<1x25xf32>, vector<2x25xf32> -> vector<3x25xf32>
    %cst_25 = arith.constant dense<0.000000e+00> : vector<3x512xf32>
    %73 = tpu.matmul %72, %66, %cst_25 {dimension_numbers = #tpu.dot_dimension_numbers<[1], [0], [0], [1], [0, 0, 1, 1], [], []>} : vector<3x25xf32>, vector<25x512xf32>, vector<3x512xf32> -> vector<3x512xf32>
    %74 = vector.extract_strided_slice %73 {offsets = [0, 0], sizes = [1, 512], strides = [1, 1]} : vector<3x512xf32> to vector<1x512xf32>
    %cst_26 = arith.constant 1.000000e+00 : f32
    %75 = vector.broadcast %cst_26 : f32 to vector<1x512xf32>
    %76 = arith.divf %75, %74 : vector<1x512xf32>
    %77 = vector.extract_strided_slice %73 {offsets = [1, 0], sizes = [2, 512], strides = [1, 1]} : vector<3x512xf32> to vector<2x512xf32>
    %78 = vector.broadcast %76 : vector<1x512xf32> to vector<2x512xf32>
    %79 = arith.mulf %77, %78 : vector<2x512xf32>
    %80 = arith.addf %12, %79 : vector<2x512xf32>
    %c1_27 = arith.constant 1 : index
    %c0_28 = arith.constant 0 : index
    %c0_29 = arith.constant 0 : index
    %81 = vector.load %arg13[%c1_27, %c0_28, %c0_29] : memref<2x2x512xf32, #tpu.memory_space<vmem>>, vector<1x2x512xf32>
    %82 = vector.shape_cast %81 : vector<1x2x512xf32> to vector<2x512xf32>
    %83 = vector.shape_cast %80 : vector<2x512xf32> to vector<1x2x512xf32>
    tpu.vector_store %arg13[%c1_27, %c0_28, %c0_29], %83 {strides = array<i32>} : memref<2x2x512xf32, #tpu.memory_space<vmem>>, vector<1x2x512xf32>,
    %c0_30 = arith.constant 0 : index
    %c0_31 = arith.constant 0 : index
    %84 = vector.load %arg1[%c0_30, %c0_31] : memref<2x100xf32, #tpu.memory_space<vmem>>, vector<2x100xf32>
    %c0_i32_32 = arith.constant 0 : i32
    %85 = tpu.memref_slice %arg20[%c0_i32_32] : memref<6x!tpu.dma_semaphore, #tpu.memory_space<semaphore_mem>> -> memref<1x!tpu.dma_semaphore, #tpu.memory_space<semaphore_mem>>
    %86 = tpu.memref_squeeze %85 : memref<1x!tpu.dma_semaphore, #tpu.memory_space<semaphore_mem>> -> memref<!tpu.dma_semaphore, #tpu.memory_space<semaphore_mem>>
    tpu.wait_dma2 semaphore(%86 : memref<!tpu.dma_semaphore, #tpu.memory_space<semaphore_mem>>) src(%arg6 : memref<100x512xf32, #tpu.memory_space<any>>) dst(%arg14 : memref<100x512xf32, #tpu.memory_space<vmem>>)
    %c1_i32_33 = arith.constant 1 : i32
    %87 = tpu.memref_slice %arg20[%c1_i32_33] : memref<6x!tpu.dma_semaphore, #tpu.memory_space<semaphore_mem>> -> memref<1x!tpu.dma_semaphore, #tpu.memory_space<semaphore_mem>>
    %88 = tpu.memref_squeeze %87 : memref<1x!tpu.dma_semaphore, #tpu.memory_space<semaphore_mem>> -> memref<!tpu.dma_semaphore, #tpu.memory_space<semaphore_mem>>
    tpu.wait_dma2 semaphore(%88 : memref<!tpu.dma_semaphore, #tpu.memory_space<semaphore_mem>>) src(%arg7 : memref<1x512xf32, #tpu.memory_space<any>>) dst(%arg15 : memref<1x512xf32, #tpu.memory_space<vmem>>)
    %c0_34 = arith.constant 0 : index
    %c0_35 = arith.constant 0 : index
    %89 = vector.load %arg14[%c0_34, %c0_35] : memref<100x512xf32, #tpu.memory_space<vmem>>, vector<100x512xf32>
    %cst_36 = arith.constant dense<0.000000e+00> : vector<2x512xf32>
    %90 = tpu.matmul %84, %89, %cst_36 {dimension_numbers = #tpu.dot_dimension_numbers<[1], [0], [0], [1], [0, 0, 1, 1], [], []>} : vector<2x100xf32>, vector<100x512xf32>, vector<2x512xf32> -> vector<2x512xf32>
    %c0_37 = arith.constant 0 : index
    %c0_38 = arith.constant 0 : index
    %91 = vector.load %arg15[%c0_37, %c0_38] : memref<1x512xf32, #tpu.memory_space<vmem>>, vector<1x512xf32>
    %92 = vector.broadcast %91 : vector<1x512xf32> to vector<2x512xf32>
    %93 = arith.addf %90, %92 : vector<2x512xf32>
    %cst_39 = arith.constant 0.000000e+00 : f32
    %94 = vector.broadcast %cst_39 : f32 to vector<2x512xf32>
    %95 = arith.maximumf %93, %94 : vector<2x512xf32>
    %c2_i32_40 = arith.constant 2 : i32
    %96 = tpu.memref_slice %arg20[%c2_i32_40] : memref<6x!tpu.dma_semaphore, #tpu.memory_space<semaphore_mem>> -> memref<1x!tpu.dma_semaphore, #tpu.memory_space<semaphore_mem>>
    %97 = tpu.memref_squeeze %96 : memref<1x!tpu.dma_semaphore, #tpu.memory_space<semaphore_mem>> -> memref<!tpu.dma_semaphore, #tpu.memory_space<semaphore_mem>>
    tpu.wait_dma2 semaphore(%97 : memref<!tpu.dma_semaphore, #tpu.memory_space<semaphore_mem>>) src(%arg8 : memref<512x256xf32, #tpu.memory_space<any>>) dst(%arg16 : memref<512x256xf32, #tpu.memory_space<vmem>>)
    %c3_i32_41 = arith.constant 3 : i32
    %98 = tpu.memref_slice %arg20[%c3_i32_41] : memref<6x!tpu.dma_semaphore, #tpu.memory_space<semaphore_mem>> -> memref<1x!tpu.dma_semaphore, #tpu.memory_space<semaphore_mem>>
    %99 = tpu.memref_squeeze %98 : memref<1x!tpu.dma_semaphore, #tpu.memory_space<semaphore_mem>> -> memref<!tpu.dma_semaphore, #tpu.memory_space<semaphore_mem>>
    tpu.wait_dma2 semaphore(%99 : memref<!tpu.dma_semaphore, #tpu.memory_space<semaphore_mem>>) src(%arg9 : memref<1x256xf32, #tpu.memory_space<any>>) dst(%arg17 : memref<1x256xf32, #tpu.memory_space<vmem>>)
    %c0_42 = arith.constant 0 : index
    %c0_43 = arith.constant 0 : index
    %100 = vector.load %arg16[%c0_42, %c0_43] : memref<512x256xf32, #tpu.memory_space<vmem>>, vector<512x256xf32>
    %cst_44 = arith.constant dense<0.000000e+00> : vector<2x256xf32>
    %101 = tpu.matmul %95, %100, %cst_44 {dimension_numbers = #tpu.dot_dimension_numbers<[1], [0], [0], [1], [0, 0, 1, 1], [], []>} : vector<2x512xf32>, vector<512x256xf32>, vector<2x256xf32> -> vector<2x256xf32>
    %c0_45 = arith.constant 0 : index
    %c0_46 = arith.constant 0 : index
    %102 = vector.load %arg17[%c0_45, %c0_46] : memref<1x256xf32, #tpu.memory_space<vmem>>, vector<1x256xf32>
    %103 = vector.broadcast %102 : vector<1x256xf32> to vector<2x256xf32>
    %104 = arith.addf %101, %103 : vector<2x256xf32>
    %cst_47 = arith.constant 0.000000e+00 : f32
    %105 = vector.broadcast %cst_47 : f32 to vector<2x256xf32>
    %106 = arith.maximumf %104, %105 : vector<2x256xf32>
    %c4_i32_48 = arith.constant 4 : i32
    %107 = tpu.memref_slice %arg20[%c4_i32_48] : memref<6x!tpu.dma_semaphore, #tpu.memory_space<semaphore_mem>> -> memref<1x!tpu.dma_semaphore, #tpu.memory_space<semaphore_mem>>
    %108 = tpu.memref_squeeze %107 : memref<1x!tpu.dma_semaphore, #tpu.memory_space<semaphore_mem>> -> memref<!tpu.dma_semaphore, #tpu.memory_space<semaphore_mem>>
    tpu.wait_dma2 semaphore(%108 : memref<!tpu.dma_semaphore, #tpu.memory_space<semaphore_mem>>) src(%arg10 : memref<256x50xf32, #tpu.memory_space<any>>) dst(%arg18 : memref<256x50xf32, #tpu.memory_space<vmem>>)
    %c5_i32_49 = arith.constant 5 : i32
    %109 = tpu.memref_slice %arg20[%c5_i32_49] : memref<6x!tpu.dma_semaphore, #tpu.memory_space<semaphore_mem>> -> memref<1x!tpu.dma_semaphore, #tpu.memory_space<semaphore_mem>>
    %110 = tpu.memref_squeeze %109 : memref<1x!tpu.dma_semaphore, #tpu.memory_space<semaphore_mem>> -> memref<!tpu.dma_semaphore, #tpu.memory_space<semaphore_mem>>
    tpu.wait_dma2 semaphore(%110 : memref<!tpu.dma_semaphore, #tpu.memory_space<semaphore_mem>>) src(%arg11 : memref<1x50xf32, #tpu.memory_space<any>>) dst(%arg19 : memref<1x50xf32, #tpu.memory_space<vmem>>)
    %c0_50 = arith.constant 0 : index
    %c0_51 = arith.constant 0 : index
    %111 = vector.load %arg18[%c0_50, %c0_51] : memref<256x50xf32, #tpu.memory_space<vmem>>, vector<256x50xf32>
    %cst_52 = arith.constant dense<0.000000e+00> : vector<2x50xf32>
    %112 = tpu.matmul %106, %111, %cst_52 {dimension_numbers = #tpu.dot_dimension_numbers<[1], [0], [0], [1], [0, 0, 1, 1], [], []>} : vector<2x256xf32>, vector<256x50xf32>, vector<2x50xf32> -> vector<2x50xf32>
    %c0_53 = arith.constant 0 : index
    %c0_54 = arith.constant 0 : index
    %113 = vector.load %arg19[%c0_53, %c0_54] : memref<1x50xf32, #tpu.memory_space<vmem>>, vector<1x50xf32>
    %114 = vector.broadcast %113 : vector<1x50xf32> to vector<2x50xf32>
    %115 = arith.addf %112, %114 : vector<2x50xf32>
    %c0_55 = arith.constant 0 : index
    %c0_56 = arith.constant 0 : index
    %116 = vector.load %arg12[%c0_55, %c0_56] : memref<2x50xf32, #tpu.memory_space<vmem>>, vector<2x50xf32>
    tpu.vector_store %arg12[%c0_55, %c0_56], %115 {strides = array<i32>} : memref<2x50xf32, #tpu.memory_space<vmem>>, vector<2x50xf32>,
    return
  }
  func.func @transform_0(%arg0: i32) -> (i32, i32) {
    %c0_i32 = arith.constant 0 : i32
    %c0_i32_0 = arith.constant 0 : i32
    %c0_i32_1 = arith.constant 0 : i32
    return %c0_i32, %c0_i32_0 : i32, i32
  }
  func.func @transform_1(%arg0: i32) -> (i32, i32) {
    %c0_i32 = arith.constant 0 : i32
    %c0_i32_0 = arith.constant 0 : i32
    %c0_i32_1 = arith.constant 0 : i32
    return %c0_i32, %c0_i32_0 : i32, i32
  }
  func.func @transform_2(%arg0: i32) -> (i32, i32, i32) {
    %c0_i32 = arith.constant 0 : i32
    %c0_i32_0 = arith.constant 0 : i32
    %c0_i32_1 = arith.constant 0 : i32
    %c0_i32_2 = arith.constant 0 : i32
    return %c0_i32, %c0_i32_0, %c0_i32_1 : i32, i32, i32
  }
  func.func @transform_3(%arg0: i32) -> (i32, i32, i32) {
    %c0_i32 = arith.constant 0 : i32
    %c0_i32_0 = arith.constant 0 : i32
    %c0_i32_1 = arith.constant 0 : i32
    %c0_i32_2 = arith.constant 0 : i32
    return %c0_i32, %c0_i32_0, %c0_i32_1 : i32, i32, i32
  }
  func.func @transform_4(%arg0: i32) -> (i32, i32, i32) {
    %c0_i32 = arith.constant 0 : i32
    %c0_i32_0 = arith.constant 0 : i32
    %c0_i32_1 = arith.constant 0 : i32
    %c0_i32_2 = arith.constant 0 : i32
    return %c0_i32, %c0_i32_0, %c0_i32_1 : i32, i32, i32
  }
  func.func @transform_11(%arg0: i32) -> (i32, i32) {
    %c0_i32 = arith.constant 0 : i32
    %c0_i32_0 = arith.constant 0 : i32
    %c0_i32_1 = arith.constant 0 : i32
    return %c0_i32, %c0_i32_0 : i32, i32
  }
  func.func @transform_12(%arg0: i32) -> (i32, i32, i32) {
    %c0_i32 = arith.constant 0 : i32
    %c0_i32_0 = arith.constant 0 : i32
    %c0_i32_1 = arith.constant 0 : i32
    %c0_i32_2 = arith.constant 0 : i32
    return %c0_i32, %c0_i32_0, %c0_i32_1 : i32, i32, i32
  }
}

</mosaic_0001>

<bundles_post_ra>
// kernel: _lambda_.1
= control target key start
LH: loop header
LB: loop body
LE: loop exit
PB: predicated region body
PF: predicated region fallthrough
CT: control target
= control target key end

     0   :  { %18 = vsyncpa [#allocation10], 0  ;;  %s3388_s0 = inlined_call_operand.vmem [shape: f32[2,100], index: 0, kind: input, shape index: {}]   ;;  %s3389_s1 = inlined_call_operand.vmem [shape: f32[2,512], index: 1, kind: input, shape index: {}]   ;;  %s3390_s2 = inlined_call_operand.vmem [shape: f32[2,25,2], index: 2, kind: input, shape index: {}]   ;;  %s3391_s3 = inlined_call_operand.hbm [shape: f32[2,2,25], index: 3, kind: input, shape index: {}]   ;;  %s3392_s4 = inlined_call_operand.hbm [shape: f32[2,2,25], index: 4, kind: input, shape index: {}]   ;;  %s3393_s5 = inlined_call_operand.vmem [shape: f32[100,512], index: 5, kind: input, shape index: {}]   ;;  %s3394_s6 = inlined_call_operand.hbm [shape: f32[1,512], index: 6, kind: input, shape index: {}]   ;;  %s3395_s7 = inlined_call_operand.hbm [shape: f32[512,256], index: 7, kind: input, shape index: {}]   ;;  %s3396_s8 = inlined_call_operand.vmem [shape: f32[1,256], index: 8, kind: input, shape index: {}]   ;;  %s3397_s9 = inlined_call_operand.hbm [shape: f32[256,50], index: 9, kind: input, shape index: {}]   ;;  %s3398_s10 = inlined_call_operand.vmem [shape: f32[1,50], index: 10, kind: input, shape index: {}]   ;;  %s3399_s11 = inlined_call_operand.vmem [shape: f32[2,50], index: 11, kind: output, shape index: {0}]   ;;  %s3400_s12 = inlined_call_operand.vmem [shape: f32[2,2,512], index: 12, kind: output, shape index: {1}]  }
   0x1   :  { %19 = vsyncpa [#allocation12], 0  ;;  %s2495_s21 = smov [#allocation9]  }
   0x2   :  { %s31_s22 = sshll.u32 %s2495_s21, 4  ;;  %s32_s22 = int_to_ptr.vmem [resolvable:$true] %s31_s22 }
   0x3   :  { %s2387_s23 = scalar_lea.vmem %s32_s22, 64  ;;  %p2392_p1 = scmp.lt.s32.totalorder %s32_s22, %s32_s22 }
   0x4   :  { %p2388_p0 = scmp.ne.s32.totalorder %s32_s22, %s2387_s23  ;;  %p2393_p2 = scmp.lt.s32.totalorder %s2387_s23, %s2387_s23 }
   0x6   :  { %p2394_p3 = por %p2393_p2, %p2392_p1 }
   0x8   :  { %p2395_p4 = pnand %p2394_p3, %p2388_p0 }
   0xa   :  { %2398 = shalt.err (!%p2395_p4)
}
   0xb   :  { %s2496_s24 = smov 32   ;;  %s2497_s25 = smov 2  }
   0xc   :  { %37 = dma.hbm_to_vmem [thread:$0]  %s3391_s3, 64, %s32_s22, [#allocation10], %s2496_s24, %s2496_s24, %s2497_s25  }
   0xd   :  { %s2498_s28 = smov [#allocation11]  }
   0xe   :  { %s43_s29 = sshll.u32 %s2498_s28, 4  ;;  %s44_s29 = int_to_ptr.vmem [resolvable:$true] %s43_s29 }
   0xf   :  { %s2407_s30 = scalar_lea.vmem %s44_s29, 64  ;;  %p2412_p6 = scmp.lt.s32.totalorder %s44_s29, %s44_s29 }
  0x10   :  { %p2408_p5 = scmp.ne.s32.totalorder %s44_s29, %s2407_s30  ;;  %p2413_p7 = scmp.lt.s32.totalorder %s2407_s30, %s2407_s30 }
  0x12   :  { %p2414_p8 = por %p2413_p7, %p2412_p6 }
  0x14   :  { %p2415_p9 = pnand %p2414_p8, %p2408_p5 }
  0x16   :  { %2418 = shalt.err (!%p2415_p9)
}
  0x17   :  { %49 = dma.hbm_to_vmem [thread:$0]  %s3392_s4, 64, %s44_s29, [#allocation12], %s2496_s24, %s2496_s24, %s2497_s25  }
  0x18   :  { %2479 = dma.done.wait [#allocation10], 64  }
  0x19   :  { %2480 = vsyncadd [#allocation10], 4294967232 }
  0x1a   :  { %2481 = dma.done.wait [#allocation12], 64  }
  0x1b   :  { %2482 = vsyncadd [#allocation12], 4294967232  ;;  %v89_v0 = vld [vmem:[%s3393_s5] sm:$0xff]  ;;  %v91_v1 = vld [vmem:[%s3393_s5 + $0x8] sm:$0xff] }
  0x1c   :  { %v93_v2 = vld [vmem:[%s3393_s5 + $0x10] sm:$0xff]  ;;  %90 = vst [vmem:[#allocation2 + $0xb0] sm:$0xff] %v89_v0  ;;  %92 = vst [vmem:[#allocation2 + $0xd0] sm:$0xff] %v91_v1  ;;  %v95_v3 = vld [vmem:[%s3393_s5 + $0x18] sm:$0xff] }
  0x1d   :  { %94 = vst [vmem:[#allocation2 + $0x10] sm:$0xff] %v93_v2  ;;  %v97_v4 = vld [vmem:[%s3393_s5 + $0x20] sm:$0xff]  ;;  %v99_v5 = vld [vmem:[%s3393_s5 + $0x28] sm:$0xff]  ;;  %96 = vst [vmem:[#allocation2 + $0x48] sm:$0xff] %v95_v3 }
  0x1e   :  { %98 = vst [vmem:[#allocation2 + $0x160] sm:$0xff] %v97_v4  ;;  %100 = vst [vmem:[#allocation2 + $0x128] sm:$0xff] %v99_v5  ;;  %v101_v6 = vld [vmem:[%s3393_s5 + $0x30] sm:$0xff]  ;;  %v103_v7 = vld [vmem:[%s3393_s5 + $0x38] sm:$0xff] }
  0x1f   :  { %v105_v8 = vld [vmem:[%s3393_s5 + $0x40] sm:$0xff]  ;;  %102 = vst [vmem:[#allocation2 + $0x40] sm:$0xff] %v101_v6  ;;  %104 = vst [vmem:[#allocation2 + $0x178] sm:$0xff] %v103_v7  ;;  %v107_v9 = vld [vmem:[%s3393_s5 + $0x48] sm:$0xff] }
  0x20   :  { %106 = vst [vmem:[#allocation2 + $0x108] sm:$0xff] %v105_v8  ;;  %v109_v10 = vld [vmem:[%s3393_s5 + $0x50] sm:$0xff]  ;;  %v111_v11 = vld [vmem:[%s3393_s5 + $0x58] sm:$0xff]  ;;  %108 = vst [vmem:[#allocation2 + $0x110] sm:$0xff] %v107_v9 }
  0x21   :  { %110 = vst [vmem:[#allocation2 + $0x90] sm:$0xff] %v109_v10  ;;  %112 = vst [vmem:[#allocation2 + $0x118] sm:$0xff] %v111_v11  ;;  %v113_v12 = vld [vmem:[%s3393_s5 + $0x60] sm:$0xff]  ;;  %v115_v13 = vld [vmem:[%s3393_s5 + $0x68] sm:$0xff] }
  0x22   :  { %v117_v14 = vld [vmem:[%s3393_s5 + $0x70] sm:$0xff]  ;;  %114 = vst [vmem:[#allocation2 + $0x148] sm:$0xff] %v113_v12  ;;  %116 = vst [vmem:[#allocation2 + $0x100] sm:$0xff] %v115_v13  ;;  %v119_v15 = vld [vmem:[%s3393_s5 + $0x78] sm:$0xff] }
  0x23   :  { %118 = vst [vmem:[#allocation2 + $0x58] sm:$0xff] %v117_v14  ;;  %v121_v16 = vld [vmem:[%s3393_s5 + $0x80] sm:$0xff]  ;;  %v123_v17 = vld [vmem:[%s3393_s5 + $0x88] sm:$0xff]  ;;  %120 = vst [vmem:[#allocation2 + $0xd8] sm:$0xff] %v119_v15 }
  0x24   :  { %122 = vst [vmem:[#allocation2 + $0x180] sm:$0xff] %v121_v16  ;;  %124 = vst [vmem:[#allocation2 + $0x130] sm:$0xff] %v123_v17  ;;  %v125_v18 = vld [vmem:[%s3393_s5 + $0x90] sm:$0xff]  ;;  %v127_v19 = vld [vmem:[%s3393_s5 + $0x98] sm:$0xff] }
  0x25   :  { %v129_v20 = vld [vmem:[%s3393_s5 + $0xa0] sm:$0xff]  ;;  %126 = vst [vmem:[#allocation2 + $0x138] sm:$0xff] %v125_v18  ;;  %128 = vst [vmem:[#allocation2 + $0x78] sm:$0xff] %v127_v19  ;;  %v131_v21 = vld [vmem:[%s3393_s5 + $0xa8] sm:$0xff] }
  0x26   :  { %130 = vst [vmem:[#allocation2 + $0xa0] sm:$0xff] %v129_v20  ;;  %v133_v22 = vld [vmem:[%s3393_s5 + $0xb0] sm:$0xff]  ;;  %v135_v23 = vld [vmem:[%s3393_s5 + $0xb8] sm:$0xff]  ;;  %132 = vst [vmem:[#allocation2] sm:$0xff] %v131_v21 }
  0x27   :  { %134 = vst [vmem:[#allocation2 + $0x20] sm:$0xff] %v133_v22  ;;  %136 = vst [vmem:[#allocation2 + $0xe0] sm:$0xff] %v135_v23  ;;  %v137_v24 = vld [vmem:[%s3393_s5 + $0xc0] sm:$0xff]  ;;  %v139_v25 = vld [vmem:[%s3393_s5 + $0xc8] sm:$0xff] }
  0x28   :  { %v141_v26 = vld [vmem:[%s3393_s5 + $0xd0] sm:$0xff]  ;;  %138 = vst [vmem:[#allocation2 + $0xf0] sm:$0xff] %v137_v24  ;;  %140 = vst [vmem:[#allocation2 + $0x188] sm:$0xff] %v139_v25  ;;  %v143_v27 = vld [vmem:[%s3393_s5 + $0xd8] sm:$0xff] }
  0x29   :  { %142 = vst [vmem:[#allocation2 + $0xa8] sm:$0xff] %v141_v26  ;;  %v145_v28 = vld [vmem:[%s3393_s5 + $0xe0] sm:$0xff]  ;;  %v147_v29 = vld [vmem:[%s3393_s5 + $0xe8] sm:$0xff]  ;;  %144 = vst [vmem:[#allocation2 + $0x88] sm:$0xff] %v143_v27 }
  0x2a   :  { %146 = vst [vmem:[#allocation2 + $0xb8] sm:$0xff] %v145_v28  ;;  %148 = vst [vmem:[#allocation2 + $0x170] sm:$0xff] %v147_v29  ;;  %v149_v30 = vld [vmem:[%s3393_s5 + $0xf0] sm:$0xff]  ;;  %v151_v31 = vld [vmem:[%s3393_s5 + $0xf8] sm:$0xff] }
  0x2b   :  { %v153_v32 = vld [vmem:[%s3393_s5 + $0x100] sm:$0xff]  ;;  %150 = vst [vmem:[#allocation2 + $0xc0] sm:$0xff] %v149_v30  ;;  %152 = vst [vmem:[#allocation2 + $0x140] sm:$0xff] %v151_v31  ;;  %v155_v33 = vld [vmem:[%s3393_s5 + $0x108] sm:$0xff] }
  0x2c   :  { %154 = vst [vmem:[#allocation2 + $0x50] sm:$0xff] %v153_v32  ;;  %v157_v34 = vld [vmem:[%s3393_s5 + $0x110] sm:$0xff]  ;;  %v159_v35 = vld [vmem:[%s3393_s5 + $0x118] sm:$0xff]  ;;  %156 = vst [vmem:[#allocation2 + $0x168] sm:$0xff] %v155_v33 }
  0x2d   :  { %158 = vst [vmem:[#allocation2 + $0x190] sm:$0xff] %v157_v34  ;;  %160 = vst [vmem:[#allocation2 + $0x38] sm:$0xff] %v159_v35  ;;  %v161_v36 = vld [vmem:[%s3393_s5 + $0x120] sm:$0xff]  ;;  %v163_v37 = vld [vmem:[%s3393_s5 + $0x128] sm:$0xff] }
  0x2e   :  { %v165_v38 = vld [vmem:[%s3393_s5 + $0x130] sm:$0xff]  ;;  %162 = vst [vmem:[#allocation2 + $0x60] sm:$0xff] %v161_v36  ;;  %164 = vst [vmem:[#allocation2 + $0x18] sm:$0xff] %v163_v37  ;;  %v167_v39 = vld [vmem:[%s3393_s5 + $0x138] sm:$0xff] }
  0x2f   :  { %166 = vst [vmem:[#allocation2 + $0x158] sm:$0xff] %v165_v38  ;;  %v169_v40 = vld [vmem:[%s3393_s5 + $0x140] sm:$0xff]  ;;  %v171_v41 = vld [vmem:[%s3393_s5 + $0x148] sm:$0xff]  ;;  %168 = vst [vmem:[#allocation2 + $0x120] sm:$0xff] %v167_v39 }
  0x30   :  { %170 = vst [vmem:[#allocation2 + $0x198] sm:$0xff] %v169_v40  ;;  %172 = vst [vmem:[#allocation2 + $0x68] sm:$0xff] %v171_v41  ;;  %v173_v42 = vld [vmem:[%s3393_s5 + $0x150] sm:$0xff]  ;;  %v175_v43 = vld [vmem:[%s3393_s5 + $0x158] sm:$0xff] }
  0x31   :  { %v177_v44 = vld [vmem:[%s3393_s5 + $0x160] sm:$0xff]  ;;  %174 = vst [vmem:[#allocation2 + $0x30] sm:$0xff] %v173_v42  ;;  %176 = vst [vmem:[#allocation2 + $0xc8] sm:$0xff] %v175_v43  ;;  %v179_v45 = vld [vmem:[%s3393_s5 + $0x168] sm:$0xff] }
  0x32   :  { %178 = vst [vmem:[#allocation2 + $0xf8] sm:$0xff] %v177_v44  ;;  %v181_v46 = vld [vmem:[%s3393_s5 + $0x170] sm:$0xff]  ;;  %v183_v47 = vld [vmem:[%s3393_s5 + $0x178] sm:$0xff]  ;;  %180 = vst [vmem:[#allocation2 + $0x28] sm:$0xff] %v179_v45 }
  0x33   :  { %182 = vst [vmem:[#allocation2 + $0x8] sm:$0xff] %v181_v46  ;;  %184 = vst [vmem:[#allocation2 + $0x80] sm:$0xff] %v183_v47  ;;  %v185_v48 = vld [vmem:[%s3393_s5 + $0x180] sm:$0xff]  ;;  %v187_v49 = vld [vmem:[%s3393_s5 + $0x188] sm:$0xff] }
  0x34   :  { %v189_v50 = vld [vmem:[%s3393_s5 + $0x190] sm:$0xff]  ;;  %186 = vst [vmem:[#allocation2 + $0x98] sm:$0xff] %v185_v48  ;;  %188 = vst [vmem:[#allocation2 + $0x150] sm:$0xff] %v187_v49  ;;  %v191_v51 = vld [vmem:[%s3393_s5 + $0x198] sm:$0xff] }
  0x35   :  { %190 = vst [vmem:[#allocation2 + $0xe8] sm:$0xff] %v189_v50  ;;  %192 = vst [vmem:[#allocation2 + $0x70] sm:$0xff] %v191_v51 }
  0x36   :  { %200 = vsyncadd [#allocation8], 6656  ;;  %v244_v52 = vld [vmem:[%s3396_s8] sm:$0x3]  ;;  %s2499_s4 = smov [#allocation3]   ;;  %s2500_s21 = smov [#allocation4]  }
  0x37   :  { %s209_s20 = sshll.u32 %s2499_s4, 4  ;;  %s221_s22 = sshll.u32 %s2500_s21, 4  ;;  %245 = vst [vmem:[#allocation5] sm:$0x3] %v244_v52  ;;  %s210_s20 = int_to_ptr.vmem [resolvable:$true] %s209_s20  ;;  %s222_s22 = int_to_ptr.vmem [resolvable:$true] %s221_s22 }
  0x38   :  { %s2427_s23 = scalar_lea.vmem %s210_s20, 64  ;;  %p2432_p11 = scmp.lt.s32.totalorder %s210_s20, %s210_s20 }
  0x39   :  { %p2428_p10 = scmp.ne.s32.totalorder %s210_s20, %s2427_s23  ;;  %p2433_p12 = scmp.lt.s32.totalorder %s2427_s23, %s2427_s23 }
  0x3b   :  { %p2434_p13 = por %p2433_p12, %p2432_p11 }
  0x3d   :  { %p2435_p0 = pnand %p2434_p13, %p2428_p10 }
  0x3f   :  { %2438 = shalt.err (!%p2435_p0)  }
  0x40   :  { %212 = dma.hbm_to_vmem [thread:$0]  %s3394_s6, 64, %s210_s20, [#allocation8 + $0x1] }
  0x41   :  { %s2447_s25 = scalar_lea.vmem %s222_s22, 16384  ;;  %p2452_p2 = scmp.lt.s32.totalorder %s222_s22, %s222_s22 }
  0x42   :  { %p2448_p1 = scmp.ne.s32.totalorder %s222_s22, %s2447_s25  ;;  %p2453_p3 = scmp.lt.s32.totalorder %s2447_s25, %s2447_s25 }
  0x44   :  { %p2454_p4 = por %p2453_p3, %p2452_p2 }
  0x46   :  { %p2455_p5 = pnand %p2454_p4, %p2448_p1 }
  0x48   :  { %2458 = shalt.err (!%p2455_p5)  }
  0x49   :  { %224 = dma.hbm_to_vmem [thread:$0]  %s3395_s7, 16384, %s222_s22, [#allocation8 + $0x2] }
  0x4a   :  { %271 = vsyncadd [#allocation8 + $0x3], 32  ;;  %v303_v53 = vld [vmem:[%s3398_s10] sm:$0x1]  ;;  %s2501_s29 = smov [#allocation6]  }
  0x4b   :  { %s280_s30 = sshll.u32 %s2501_s29, 4  ;;  %304 = vst [vmem:[#allocation7] sm:$0x1] %v303_v53  ;;  %s281_s30 = int_to_ptr.vmem [resolvable:$true] %s280_s30 }
  0x4c   :  { %s2467_s6 = scalar_lea.vmem %s281_s30, 4096  ;;  %p2472_p7 = scmp.lt.s32.totalorder %s281_s30, %s281_s30 }
  0x4d   :  { %p2468_p6 = scmp.ne.s32.totalorder %s281_s30, %s2467_s6  ;;  %p2473_p8 = scmp.lt.s32.totalorder %s2467_s6, %s2467_s6 }
  0x4f   :  { %p2474_p9 = por %p2473_p8, %p2472_p7 }
  0x51   :  { %p2475_p10 = pnand %p2474_p9, %p2468_p6 }
  0x53   :  { %2478 = shalt.err (!%p2475_p10)  }
  0x54   :  { %283 = dma.hbm_to_vmem [thread:$0]  %s3397_s9, 4096, %s281_s30, [#allocation8 + $0x4]  ;;  %v335_v54 = vld [vmem:[%s3390_s2 + $0x18] sm:$0x1]  ;;  %v334_v55 = vld [vmem:[%s3390_s2 + $0x10] sm:$0xff]  ;;  %v2502_v56 = vmov 0  }
  0x55   :  { %2231 = vset.pattern.permute.xlu1 %v2502_v56  ;;  %2229 = vset.pattern.permute.xlu0 %v2502_v56 }
  0x56   :  { %390 = vperm.xlu0 %2229, %v335_v54   ;;  %385 = vperm.xlu1 %2231, %v334_v55  }
  0x57   :  { %330 = vsyncadd [#allocation8 + $0x5], 16  ;;  %v2503_v57 = vmov 1   ;;  %v333_v58 = vld [vmem:[%s3390_s2 + $0x8] sm:$0xff]  ;;  %v332_v59 = vld [vmem:[%s3390_s2] sm:$0xff]  ;;  %v337_v0 = vlaneseq }
  0x58   :  { %v2161_v60 = vld [vmem:[%s3390_s2 + $0x38] sm:$0x1]  ;;  %v2160_v61 = vld [vmem:[%s3390_s2 + $0x30] sm:$0xff]  ;;  %v2159_v62 = vld [vmem:[%s3390_s2 + $0x28] sm:$0xff] }
  0x59   :  { %v2158_v63 = vld [vmem:[%s3390_s2 + $0x20] sm:$0xff]  ;;  %v2772_v1 = vshrl.u32 %v337_v0, 7 }
  0x5a   :  { %2230 = vset.pattern.permute.xlu0 %v2503_v57  ;;  %2232 = vset.pattern.permute.xlu1 %v2503_v57  ;;  %v331_v4 = vld [vmem:[%s3389_s1] sm:$0xff] }
  0x5b   :  { %458 = vperm.xlu0 %2230, %v335_v54   ;;  %454 = vperm.xlu1 %2232, %v334_v55   ;;  %v2775_v2 = vsub.s32 1, %v2772_v1  ;;  %v2778_v3 = vsub.s32 0, %v2772_v1  ;;  %v419_v6 = vsub.s32 5, %v2772_v1  ;;  %v347_v8 = vsub.s32 4, %v2772_v1 }
  0x5c   :  { %v423_v10 = vsub.s32 7, %v2772_v1  ;;  %v351_v13 = vsub.s32 6, %v2772_v1  ;;  %v415_v23 = vsub.s32 3, %v2772_v1  ;;  %v343_v24 = vsub.s32 2, %v2772_v1 }
  0x5d   :  { %v412_v7 = vrot.slane %v331_v4, %v2775_v2  ;;  %v340_v9 = vrot.slane %v331_v4, %v2778_v3  ;;  %v420_v11 = vrot.slane %v331_v4, %v419_v6  ;;  %v348_v14 = vrot.slane %v331_v4, %v347_v8 }
  0x5e   :  { %v424_v18 = vrot.slane %v331_v4, %v423_v10  ;;  %v352_v21 = vrot.slane %v331_v4, %v351_v13  ;;  %v416_v31 = vrot.slane %v331_v4, %v415_v23  ;;  %v344_v33 = vrot.slane %v331_v4, %v343_v24 }
  0x5f   :  { %2233 = vset.pattern.permute.xlu1 %v2502_v56  ;;  %450 = vperm.xlu0 %2230, %v333_v58   ;;  %v2789_v12 = vrot.slane %v412_v7, %v2775_v2  ;;  %v2793_v16 = vrot.slane %v340_v9, %v2778_v3  ;;  %v2796_v19 = vrot.slane %v420_v11, %v2775_v2 }
  0x60   :  { %380 = vperm.xlu1 %2233, %v333_v58   ;;  %v2800_v22 = vrot.slane %v348_v14, %v2778_v3  ;;  %v2806_v26 = vrot.slane %v424_v18, %v2775_v2  ;;  %v2810_v29 = vrot.slane %v352_v21, %v2778_v3  ;;  %v2823_v41 = vrot.slane %v416_v31, %v2775_v2 }
  0x61   :  { %v2826_v42 = vrot.slane %v344_v33, %v2778_v3 }
  0x63   :  { %446 = vperm.xlu0 %2230, %v332_v59  }
  0x64   :  { %375 = vperm.xlu1 %2233, %v332_v59  }
  0x67   :  { %968 = vperm.xlu0 %2230, %v2161_v60  }
  0x68   :  { %936 = vperm.xlu1 %2233, %v2161_v60  }
  0x6b   :  { %964 = vperm.xlu0 %2230, %v2160_v61  }
  0x6c   :  { %931 = vperm.xlu1 %2233, %v2160_v61  }
  0x6f   :  { %960 = vperm.xlu0 %2230, %v2159_v62  }
  0x70   :  { %926 = vperm.xlu1 %2233, %v2159_v62  }
  0x73   :  { %956 = vperm.xlu0 %2230, %v2158_v63  }
  0x74   :  { %921 = vperm.xlu1 %2233, %v2158_v63  }
  0xd1   :  { %v391_v5 = vpop.permute.xlu0 %390  ;;  %v386_v17 = vpop.permute.xlu1 %385 }
  0xd2   :  { %v405_v25 = vsub.f32 %v2793_v16, %v391_v5  ;;  %v407_v30 = vsub.f32 %v2800_v22, %v391_v5  ;;  %v408_v39 = vsub.f32 %v2810_v29, %v391_v5  ;;  %v401_v43 = vsub.f32 %v2793_v16, %v386_v17 }
  0xd3   :  { %v402_v49 = vsub.f32 %v2826_v42, %v386_v17  ;;  %v403_v56 = vsub.f32 %v2800_v22, %v386_v17  ;;  %v404_v58 = vsub.f32 %v2810_v29, %v386_v17  ;;  %v406_v63 = vsub.f32 %v2826_v42, %v391_v5 }
  0xd4   :  { %v489_v34 = vmul.f32 %v405_v25, %v405_v25  ;;  %v491_v40 = vmul.f32 %v407_v30, %v407_v30  ;;  %v492_v47 = vmul.f32 %v408_v39, %v408_v39  ;;  %v485_v50 = vmul.f32 %v401_v43, %v401_v43 }
  0xd5   :  { %v486_v62 = vmul.f32 %v402_v49, %v402_v49  ;;  %v487_v9 = vmul.f32 %v403_v56, %v403_v56  ;;  %v488_v13 = vmul.f32 %v404_v58, %v404_v58 }
  0xd6   :  { %v459_v15 = vpop.permute.xlu0 %458  ;;  %v455_v32 = vpop.permute.xlu1 %454 }
  0xd7   :  { %v473_v20 = vsub.f32 %v2789_v12, %v459_v15  ;;  %v475_v27 = vsub.f32 %v2796_v19, %v459_v15  ;;  %v476_v35 = vsub.f32 %v2806_v26, %v459_v15  ;;  %v469_v38 = vsub.f32 %v2789_v12, %v455_v32 }
  0xd8   :  { %v470_v48 = vsub.f32 %v2823_v41, %v455_v32  ;;  %v471_v51 = vsub.f32 %v2796_v19, %v455_v32  ;;  %v472_v55 = vsub.f32 %v2806_v26, %v455_v32  ;;  %v474_v0 = vsub.f32 %v2823_v41, %v459_v15 }
  0xd9   :  { %v505_v28 = vmul.f32 %v473_v20, %v473_v20  ;;  %v507_v36 = vmul.f32 %v475_v27, %v475_v27  ;;  %v508_v44 = vmul.f32 %v476_v35, %v476_v35  ;;  %v501_v46 = vmul.f32 %v469_v38, %v469_v38 }
  0xda   :  { %v451_v52 = vpop.permute.xlu0 %450  ;;  %v502_v59 = vmul.f32 %v470_v48, %v470_v48  ;;  %v503_v4 = vmul.f32 %v471_v51, %v471_v51  ;;  %v504_v6 = vmul.f32 %v472_v55, %v472_v55  ;;  %v506_v17 = vmul.f32 %v474_v0, %v474_v0 }
  0xdb   :  { %v2818_v37 = vadd.f32 %v505_v28, %v489_v34  ;;  %v2829_v45 = vadd.f32 %v507_v36, %v491_v40  ;;  %v381_v53 = vpop.permute.xlu1 %380  ;;  %v2835_v54 = vadd.f32 %v508_v44, %v492_v47  ;;  %v2840_v57 = vadd.f32 %v501_v46, %v485_v50 }
  0xdc   :  { %v465_v60 = vsub.f32 %v2789_v12, %v451_v52  ;;  %v397_v61 = vsub.f32 %v2793_v16, %v381_v53  ;;  %v466_v7 = vsub.f32 %v2823_v41, %v451_v52  ;;  %v398_v8 = vsub.f32 %v2826_v42, %v381_v53 }
  0xdd   :  { %2234 = vrsqrt.f32 %v2818_v37  ;;  %v467_v10 = vsub.f32 %v2796_v19, %v451_v52  ;;  %v399_v11 = vsub.f32 %v2800_v22, %v381_v53  ;;  %v2853_v14 = vadd.f32 %v502_v59, %v486_v62 }
  0xde   :  { %2236 = vrsqrt.f32 %v2829_v45  ;;  %v497_v5 = vmul.f32 %v465_v60, %v465_v60  ;;  %v481_v15 = vmul.f32 %v397_v61, %v397_v61  ;;  %v2855_v18 = vadd.f32 %v503_v4, %v487_v9 }
  0xdf   :  { %2238 = vrsqrt.f32 %v2835_v54  ;;  %v2857_v20 = vadd.f32 %v504_v6, %v488_v13  ;;  %v498_v21 = vmul.f32 %v466_v7, %v466_v7  ;;  %v482_v25 = vmul.f32 %v398_v8, %v398_v8  ;;  %v376_v61 = vpop.permute.xlu1 %375 }
  0xe0   :  { %2240 = vrsqrt.f32 %v2840_v57  ;;  %v490_v27 = vmul.f32 %v406_v63, %v406_v63  ;;  %v499_v28 = vmul.f32 %v467_v10, %v467_v10  ;;  %v483_v30 = vmul.f32 %v399_v11, %v399_v11 }
  0xe1   :  { %2242 = vrsqrt.f32 %v2853_v14  ;;  %v2860_v32 = vadd.f32 %v497_v5, %v481_v15  ;;  %v468_v34 = vsub.f32 %v2806_v26, %v451_v52  ;;  %v400_v35 = vsub.f32 %v2810_v29, %v381_v53  ;;  %v447_v52 = vpop.permute.xlu0 %446 }
  0xe2   :  { %v2862_v33 = vadd.f32 %v506_v17, %v490_v27  ;;  %2244 = vrsqrt.f32 %v2855_v18  ;;  %v2868_v36 = vadd.f32 %v498_v21, %v482_v25  ;;  %v2871_v40 = vadd.f32 %v499_v28, %v483_v30 }
  0xe3   :  { %2246 = vrsqrt.f32 %v2857_v20  ;;  %v500_v43 = vmul.f32 %v468_v34, %v468_v34  ;;  %v484_v44 = vmul.f32 %v400_v35, %v400_v35  ;;  %vm611_vm0 = vcmp.eq.f32.partialorder %v2818_v37, inf }
  0xe4   :  { %2248 = vrsqrt.f32 %v2860_v32  ;;  %vm613_vm1 = vcmp.eq.f32.partialorder %v2818_v37, 0.0  ;;  %v614_v49 = vand.u32 2147483648, %v2818_v37  ;;  %vm625_vm2 = vcmp.eq.f32.partialorder %v2829_v45, inf }
  0xe5   :  { %2250 = vrsqrt.f32 %v2862_v33  ;;  %vm627_vm3 = vcmp.eq.f32.partialorder %v2829_v45, 0.0  ;;  %v628_v51 = vand.u32 2147483648, %v2829_v45  ;;  %vm632_vm4 = vcmp.eq.f32.partialorder %v2835_v54, inf }
  0xe6   :  { %2252 = vrsqrt.f32 %v2868_v36  ;;  %vm634_vm5 = vcmp.eq.f32.partialorder %v2835_v54, 0.0  ;;  %v635_v53 = vand.u32 2147483648, %v2835_v54  ;;  %vm583_vm6 = vcmp.eq.f32.partialorder %v2840_v57, inf }
  0xe7   :  { %2254 = vrsqrt.f32 %v2871_v40  ;;  %vm585_vm7 = vcmp.eq.f32.partialorder %v2840_v57, 0.0  ;;  %v2890_v55 = vadd.f32 %v500_v43, %v484_v44  ;;  %v586_v60 = vand.u32 2147483648, %v2840_v57 }
  0xe8   :  { %vm590_vm8 = vcmp.eq.f32.partialorder %v2853_v14, inf  ;;  %v461_v63 = vsub.f32 %v2789_v12, %v447_v52  ;;  %v462_v0 = vsub.f32 %v2823_v41, %v447_v52  ;;  %v593_v4 = vand.u32 2147483648, %v2853_v14 }
  0xe9   :  { %vm597_vm9 = vcmp.eq.f32.partialorder %v2855_v18, inf  ;;  %v463_v6 = vsub.f32 %v2796_v19, %v447_v52  ;;  %2256 = vrsqrt.f32 %v2890_v55  ;;  %v393_v10 = vsub.f32 %v2793_v16, %v376_v61 }
  0xea   :  { %v2235_v31 = vpop.eup %2234  ;;  %vm592_vm10 = vcmp.eq.f32.partialorder %v2853_v14, 0.0  ;;  %vm604_vm11 = vcmp.eq.f32.partialorder %v2857_v20, inf  ;;  %v607_v5 = vand.u32 2147483648, %v2857_v20  ;;  %v394_v15 = vsub.f32 %v2826_v42, %v376_v61 }
  0xeb   :  { %v2237_v38 = vpop.eup %2236  ;;  %v610_v39 = vmul.f32 %v2235_v31, %v2818_v37  ;;  %vm599_vm12 = vcmp.eq.f32.partialorder %v2855_v18, 0.0  ;;  %v464_v21 = vsub.f32 %v2806_v26, %v447_v52  ;;  %v493_v25 = vmul.f32 %v461_v63, %v461_v63 }
  0xec   :  { %v624_v46 = vmul.f32 %v2237_v38, %v2829_v45  ;;  %v2239_v47 = vpop.eup %2238  ;;  %v494_v27 = vmul.f32 %v462_v0, %v462_v0  ;;  %vm606_vm13 = vcmp.eq.f32.partialorder %v2857_v20, 0.0  ;;  %vm555_vm14 = vcmp.eq.f32.partialorder %v2860_v32, inf }
  0xed   :  { %v612_v48 = vsel %vm611_vm0, %v2818_v37, %v610_v39  ;;  %v2241_v50 = vpop.eup %2240  ;;  %v631_v59 = vmul.f32 %v2239_v47, %v2835_v54  ;;  %v600_v37 = vand.u32 2147483648, %v2855_v18  ;;  %v495_v31 = vmul.f32 %v463_v6, %v463_v6 }
  0xee   :  { %v615_v56 = vsel %vm613_vm1, %v614_v49, %v612_v48  ;;  %v626_v58 = vsel %vm625_vm2, %v2829_v45, %v624_v46  ;;  %v582_v62 = vmul.f32 %v2241_v50, %v2840_v57  ;;  %v2243_v7 = vpop.eup %2242  ;;  %v477_v43 = vmul.f32 %v393_v10, %v393_v10 }
  0xef   :  { %v629_v8 = vsel %vm627_vm3, %v628_v51, %v626_v58  ;;  %v649_v9 = vmul.f32 -10.0, %v615_v56  ;;  %v2245_v11 = vpop.eup %2244  ;;  %v633_v13 = vsel %vm632_vm4, %v2835_v54, %v631_v59  ;;  %v589_v30 = vmul.f32 %v2243_v7, %v2853_v14 }
  0xf0   :  { %v2247_v45 = vpop.eup %2246  ;;  %v584_v17 = vsel %vm583_vm6, %v2840_v57, %v582_v62  ;;  %v651_v28 = vmul.f32 -10.0, %v629_v8  ;;  %v636_v35 = vsel %vm634_vm5, %v635_v53, %v633_v13  ;;  %v596_v39 = vmul.f32 %v2245_v11, %v2855_v18 }
  0xf1   :  { %v2249_v34 = vpop.eup %2248  ;;  %v677_v38 = vmul.f32 1.442695, %v649_v9  ;;  %v587_v46 = vsel %vm585_vm7, %v586_v60, %v584_v17  ;;  %v603_v47 = vmul.f32 %v2247_v45, %v2857_v20  ;;  %vm557_vm15 = vcmp.eq.f32.partialorder %v2860_v32, 0.0 }
  0xf2   :  { %v2927_v44 = vpop.eup %2250  ;;  %v395_v48 = vsub.f32 %v2800_v22, %v376_v61  ;;  %v478_v49 = vmul.f32 %v394_v15, %v394_v15  ;;  %v558_v54 = vand.u32 2147483648, %v2860_v32  ;;  %vm562_vm0 = vcmp.eq.f32.partialorder %v2868_v36, inf }
  0xf3   :  { %v2253_v50 = vpop.eup %2252  ;;  %v565_v51 = vand.u32 2147483648, %v2868_v36  ;;  %v396_v52 = vsub.f32 %v2810_v29, %v376_v61  ;;  %v652_v56 = vmul.f32 -10.0, %v636_v35  ;;  %v681_v57 = vmul.f32 1.442695, %v651_v28  ;;  %v969_v35 = vpop.permute.xlu0 %968 }
  0xf4   :  { %v2255_v53 = vpop.eup %2254  ;;  %v591_v58 = vsel %vm590_vm8, %v2853_v14, %v589_v30  ;;  %v554_v59 = vmul.f32 %v2249_v34, %v2860_v32  ;;  %2258 = vpow2.f32 %v677_v38  ;;  %v598_v60 = vsel %vm597_vm9, %v2855_v18, %v596_v39  ;;  %v937_v38 = vpop.permute.xlu1 %936 }
  0xf5   :  { %v645_v62 = vmul.f32 -10.0, %v587_v46  ;;  %v2945_v63 = vadd.f32 %v493_v25, %v477_v43  ;;  %v605_v61 = vsel %vm604_vm11, %v2857_v20, %v603_v47  ;;  %v561_v0 = vmul.f32 %v2253_v50, %v2868_v36 }
  0xf6   :  { %v479_v6 = vmul.f32 %v395_v48, %v395_v48  ;;  %v2951_v7 = vadd.f32 %v494_v27, %v478_v49  ;;  %v594_v8 = vsel %vm592_vm10, %v593_v4, %v591_v58  ;;  %v568_v9 = vmul.f32 %v2255_v53, %v2871_v40  ;;  %v2257_v14 = vpop.eup %2256 }
  0xf7   :  { %v496_v10 = vmul.f32 %v464_v21, %v464_v21  ;;  %v480_v11 = vmul.f32 %v396_v52, %v396_v52  ;;  %2260 = vpow2.f32 %v681_v57  ;;  %v683_v13 = vmul.f32 1.442695, %v652_v56 }
  0xf8   :  { %v601_v15 = vsel %vm599_vm12, %v600_v37, %v598_v60  ;;  %v556_v45 = vsel %vm555_vm14, %v2860_v32, %v554_v59  ;;  %v608_v17 = vsel %vm606_vm13, %v607_v5, %v605_v61  ;;  %v669_v25 = vmul.f32 1.442695, %v645_v62 }
  0xf9   :  { %vm569_vm1 = vcmp.eq.f32.partialorder %v2871_v40, inf  ;;  %2262 = vrsqrt.f32 %v2945_v63  ;;  %v646_v4 = vmul.f32 -10.0, %v594_v8  ;;  %v563_v21 = vsel %vm562_vm0, %v2868_v36, %v561_v0 }
  0xfa   :  { %v2968_v18 = vadd.f32 %v495_v31, %v479_v6  ;;  %2264 = vrsqrt.f32 %v2951_v7  ;;  %v647_v37 = vmul.f32 -10.0, %v601_v15  ;;  %v559_v20 = vsel %vm557_vm15, %v558_v54, %v556_v45 }
  0xfb   :  { %v570_v5 = vsel %vm569_vm1, %v2871_v40, %v568_v9  ;;  %v2974_v27 = vadd.f32 %v496_v10, %v480_v11  ;;  %2266 = vpow2.f32 %v683_v13  ;;  %v648_v28 = vmul.f32 -10.0, %v608_v17 }
  0xfc   :  { %vm564_vm2 = vcmp.eq.f32.partialorder %v2868_v36, 0.0  ;;  %v572_v30 = vand.u32 2147483648, %v2871_v40  ;;  %2268 = vpow2.f32 %v669_v25  ;;  %vm571_vm3 = vcmp.eq.f32.partialorder %v2871_v40, 0.0 }
  0xfd   :  { %v566_v34 = vsel %vm564_vm2, %v565_v51, %v563_v21  ;;  %v575_v31 = vmul.f32 %v2257_v14, %v2890_v55  ;;  %v671_v32 = vmul.f32 1.442695, %v646_v4  ;;  %v641_v43 = vmul.f32 -10.0, %v559_v20  ;;  %v965_v21 = vpop.permute.xlu0 %964 }
  0xfe   :  { %v573_v39 = vsel %vm571_vm3, %v572_v30, %v570_v5  ;;  %2270 = vrsqrt.f32 %v2968_v18  ;;  %v673_v46 = vmul.f32 1.442695, %v647_v37  ;;  %vm576_vm4 = vcmp.eq.f32.partialorder %v2890_v55, inf  ;;  %v932_v30 = vpop.permute.xlu1 %931 }
  0xff   :  { %2272 = vrsqrt.f32 %v2974_v27  ;;  %v675_v36 = vmul.f32 1.442695, %v648_v28  ;;  %v642_v47 = vmul.f32 -10.0, %v566_v34  ;;  %v983_v48 = vsub.f32 %v2789_v12, %v969_v35 }
 0x100   :  { %v951_v40 = vsub.f32 %v2793_v16, %v937_v38  ;;  %v577_v49 = vsel %vm576_vm4, %v2890_v55, %v575_v31  ;;  %v643_v50 = vmul.f32 -10.0, %v573_v39  ;;  %v984_v54 = vsub.f32 %v2823_v41, %v969_v35 }
 0x101   :  { %v952_v51 = vsub.f32 %v2826_v42, %v937_v38  ;;  %v2988_v52 = vpop.eup %2258  ;;  %2274 = vpow2.f32 %v671_v32  ;;  %v579_v53 = vand.u32 2147483648, %v2890_v55  ;;  %v661_v56 = vmul.f32 1.442695, %v641_v43 }
 0x102   :  { %2276 = vpow2.f32 %v673_v46  ;;  %vm578_vm5 = vcmp.eq.f32.partialorder %v2890_v55, 0.0  ;;  %v663_v58 = vmul.f32 1.442695, %v642_v47  ;;  %v1015_v59 = vmul.f32 %v983_v48, %v983_v48 }
 0x103   :  { %v580_v57 = vsel %vm578_vm5, %v579_v53, %v577_v49  ;;  %v999_v60 = vmul.f32 %v951_v40, %v951_v40  ;;  %2278 = vpow2.f32 %v675_v36  ;;  %v665_v61 = vmul.f32 1.442695, %v643_v50 }
 0x104   :  { %v2992_v62 = vpop.eup %2260  ;;  %v1016_v0 = vmul.f32 %v984_v54, %v984_v54  ;;  %v1000_v6 = vmul.f32 %v952_v51, %v952_v51  ;;  %2280 = vpow2.f32 %v661_v56  ;;  %v985_v9 = vsub.f32 %v2796_v19, %v969_v35 }
 0x105   :  { %v953_v10 = vsub.f32 %v2800_v22, %v937_v38  ;;  %v644_v13 = vmul.f32 -10.0, %v580_v57  ;;  %vm527_vm6 = vcmp.eq.f32.partialorder %v2945_v63, inf  ;;  %v986_v55 = vsub.f32 %v2806_v26, %v969_v35 }
 0x106   :  { %v2263_v8 = vpop.eup %2262  ;;  %v954_v15 = vsub.f32 %v2810_v29, %v937_v38  ;;  %2282 = vpow2.f32 %v663_v58  ;;  %vm529_vm7 = vcmp.eq.f32.partialorder %v2945_v63, 0.0  ;;  %v530_v45 = vand.u32 2147483648, %v2945_v63 }
 0x107   :  { %v2265_v11 = vpop.eup %2264  ;;  %v3001_v17 = vadd.f32 %v1015_v59, %v999_v60  ;;  %2284 = vpow2.f32 %v665_v61  ;;  %v526_v14 = vmul.f32 %v2263_v8, %v2945_v63  ;;  %vm534_vm8 = vcmp.eq.f32.partialorder %v2951_v7, inf  ;;  %v3047_v8 = vpop.permute.xlu0 %960 }
 0x108   :  { %v3003_v25 = vpop.eup %2266  ;;  %v3007_v4 = vadd.f32 %v1016_v0, %v1000_v6  ;;  %v533_v20 = vmul.f32 %v2265_v11, %v2951_v7  ;;  %vm536_vm9 = vcmp.eq.f32.partialorder %v2951_v7, 0.0  ;;  %v1017_v5 = vmul.f32 %v985_v9, %v985_v9 }
 0x109   :  { %v3009_v37 = vpop.eup %2268  ;;  %v1001_v28 = vmul.f32 %v953_v10, %v953_v10  ;;  %v667_v31 = vmul.f32 1.442695, %v644_v13  ;;  %v537_v35 = vand.u32 2147483648, %v2951_v7  ;;  %v1018_v38 = vmul.f32 %v986_v55, %v986_v55 }
 0x10a   :  { %v1002_v32 = vmul.f32 %v954_v15, %v954_v15  ;;  %vm541_vm10 = vcmp.eq.f32.partialorder %v2968_v18, inf  ;;  %vm543_vm11 = vcmp.eq.f32.partialorder %v2968_v18, 0.0  ;;  %2286 = vrsqrt.f32 %v3001_v17 }
 0x10b   :  { %v2271_v34 = vpop.eup %2270  ;;  %v979_v43 = vsub.f32 %v2789_v12, %v965_v21  ;;  %v528_v46 = vsel %vm527_vm6, %v2945_v63, %v526_v14  ;;  %v544_v36 = vand.u32 2147483648, %v2968_v18  ;;  %2288 = vrsqrt.f32 %v3007_v4 }
 0x10c   :  { %v2273_v39 = vpop.eup %2272  ;;  %v947_v47 = vsub.f32 %v2793_v16, %v932_v30  ;;  %v535_v48 = vsel %vm534_vm8, %v2951_v7, %v533_v20  ;;  %v540_v40 = vmul.f32 %v2271_v34, %v2968_v18  ;;  %vm548_vm12 = vcmp.eq.f32.partialorder %v2974_v27, inf }
 0x10d   :  { %v3029_v49 = vadd.f32 %v1017_v5, %v1001_v28  ;;  %v547_v54 = vmul.f32 %v2273_v39, %v2974_v27  ;;  %vm550_vm13 = vcmp.eq.f32.partialorder %v2974_v27, 0.0  ;;  %v3035_v51 = vadd.f32 %v1018_v38, %v1002_v32 }
 0x10e   :  { %v3031_v50 = vpop.eup %2274  ;;  %v980_v53 = vsub.f32 %v2823_v41, %v965_v21  ;;  %2290 = vpow2.f32 %v667_v31  ;;  %v531_v57 = vsel %vm529_vm7, %v530_v45, %v528_v46  ;;  %v981_v58 = vsub.f32 %v2796_v19, %v965_v21  ;;  %v3063_v45 = vpop.permute.xlu1 %926 }
 0x10f   :  { %v3038_v56 = vpop.eup %2276  ;;  %v1011_v59 = vmul.f32 %v979_v43, %v979_v43  ;;  %v538_v60 = vsel %vm536_vm9, %v537_v35, %v535_v48  ;;  %v948_v61 = vsub.f32 %v2826_v42, %v932_v30  ;;  %v949_v0 = vsub.f32 %v2800_v22, %v932_v30 }
 0x110   :  { %v995_v6 = vmul.f32 %v947_v47, %v947_v47  ;;  %v3049_v9 = vpop.eup %2278  ;;  %v542_v63 = vsel %vm541_vm10, %v2968_v18, %v540_v40  ;;  %v551_v10 = vand.u32 2147483648, %v2974_v27  ;;  %2292 = vrsqrt.f32 %v3029_v49 }
 0x111   :  { %v982_v7 = vsub.f32 %v2806_v26, %v965_v21  ;;  %v3057_v11 = vpop.eup %2280  ;;  %v549_v13 = vsel %vm548_vm12, %v2974_v27, %v547_v54  ;;  %v637_v55 = vmul.f32 -10.0, %v531_v57  ;;  %2294 = vrsqrt.f32 %v3035_v51  ;;  %v957_v57 = vpop.permute.xlu0 %956 }
 0x112   :  { %v1012_v15 = vmul.f32 %v980_v53, %v980_v53  ;;  %v638_v14 = vmul.f32 -10.0, %v538_v60  ;;  %v1013_v20 = vmul.f32 %v981_v58, %v981_v58  ;;  %v950_v5 = vsub.f32 %v2810_v29, %v932_v30 }
 0x113   :  { %v975_v28 = vsub.f32 %v2789_v12, %v3047_v8  ;;  %v3068_v21 = vpop.eup %2282  ;;  %v545_v34 = vsel %vm543_vm11, %v544_v36, %v542_v63  ;;  %v996_v31 = vmul.f32 %v948_v61, %v948_v61  ;;  %v997_v35 = vmul.f32 %v949_v0, %v949_v0 }
 0x114   :  { %v3072_v38 = vadd.f32 %v1011_v59, %v995_v6  ;;  %v3074_v32 = vpop.eup %2284  ;;  %v552_v39 = vsel %vm550_vm13, %v551_v10, %v549_v13  ;;  %v976_v30 = vsub.f32 %v2823_v41, %v3047_v8  ;;  %v943_v43 = vsub.f32 %v2793_v16, %v3063_v45 }
 0x115   :  { %v944_v46 = vsub.f32 %v2826_v42, %v3063_v45  ;;  %v653_v18 = vmul.f32 1.442695, %v637_v55  ;;  %vm1121_vm14 = vcmp.eq.f32.partialorder %v3001_v17, inf  ;;  %v1124_v36 = vand.u32 2147483648, %v3001_v17 }
 0x116   :  { %v1131_v47 = vand.u32 2147483648, %v3007_v4  ;;  %v1138_v48 = vand.u32 2147483648, %v3029_v49  ;;  %v639_v27 = vmul.f32 -10.0, %v545_v34  ;;  %v655_v40 = vmul.f32 1.442695, %v638_v14 }
 0x117   :  { %v1014_v54 = vmul.f32 %v982_v7, %v982_v7  ;;  %v998_v53 = vmul.f32 %v950_v5, %v950_v5  ;;  %v2287_v58 = vpop.eup %2286  ;;  %v640_v59 = vmul.f32 -10.0, %v552_v39  ;;  %v3088_v60 = vadd.f32 %v1012_v15, %v996_v31 }
 0x118   :  { %v3090_v61 = vadd.f32 %v1013_v20, %v997_v35  ;;  %2296 = vrsqrt.f32 %v3072_v38  ;;  %v2289_v0 = vpop.eup %2288  ;;  %v1007_v6 = vmul.f32 %v975_v28, %v975_v28  ;;  %v1008_v63 = vmul.f32 %v976_v30, %v976_v30  ;;  %v922_v28 = vpop.permute.xlu1 %921 }
 0x119   :  { %v991_v10 = vmul.f32 %v943_v43, %v943_v43  ;;  %v992_v13 = vmul.f32 %v944_v46, %v944_v46  ;;  %2298 = vpow2.f32 %v653_v18  ;;  %v1145_v55 = vand.u32 2147483648, %v3035_v51 }
 0x11a   :  { %v971_v7 = vsub.f32 %v2789_v12, %v957_v57  ;;  %v972_v14 = vsub.f32 %v2823_v41, %v957_v57  ;;  %2300 = vpow2.f32 %v655_v40  ;;  %v657_v5 = vmul.f32 1.442695, %v639_v27 }
 0x11b   :  { %v1120_v15 = vmul.f32 %v2287_v58, %v3001_v17  ;;  %vm1123_vm15 = vcmp.eq.f32.partialorder %v3001_v17, 0.0  ;;  %vm1128_vm0 = vcmp.eq.f32.partialorder %v3007_v4, inf  ;;  %v3099_v20 = vadd.f32 %v1014_v54, %v998_v53  ;;  %v3101_v34 = vpop.eup %2290 }
 0x11c   :  { %v659_v31 = vmul.f32 1.442695, %v640_v59  ;;  %v1127_v35 = vmul.f32 %v2289_v0, %v3007_v4  ;;  %2302 = vrsqrt.f32 %v3088_v60  ;;  %v977_v12 = vsub.f32 %v2796_v19, %v3047_v8 }
 0x11d   :  { %2304 = vrsqrt.f32 %v3090_v61  ;;  %v945_v41 = vsub.f32 %v2800_v22, %v3063_v45  ;;  %v3110_v39 = vadd.f32 %v1007_v6, %v991_v10  ;;  %v3112_v30 = vadd.f32 %v1008_v63, %v992_v13  ;;  %v2293_v43 = vpop.eup %2292 }
 0x11e   :  { %vm1130_vm1 = vcmp.eq.f32.partialorder %v3007_v4, 0.0  ;;  %v1003_v46 = vmul.f32 %v971_v7, %v971_v7  ;;  %v1004_v18 = vmul.f32 %v972_v14, %v972_v14  ;;  %v939_v27 = vsub.f32 %v2793_v16, %v922_v28  ;;  %v2295_v54 = vpop.eup %2294 }
 0x11f   :  { %v940_v40 = vsub.f32 %v2826_v42, %v922_v28  ;;  %v1122_v53 = vsel %vm1121_vm14, %v3001_v17, %v1120_v15  ;;  %vm1135_vm2 = vcmp.eq.f32.partialorder %v3029_v49, inf  ;;  %2306 = vrsqrt.f32 %v3099_v20 }
 0x120   :  { %v978_v58 = vsub.f32 %v2806_v26, %v3047_v8  ;;  %v946_v59 = vsub.f32 %v2810_v29, %v3063_v45  ;;  %vm1142_vm3 = vcmp.eq.f32.partialorder %v3035_v51, inf  ;;  %v1009_v16 = vmul.f32 %v977_v12, %v977_v12 }
 0x121   :  { %v973_v42 = vsub.f32 %v2796_v19, %v957_v57  ;;  %v987_v0 = vmul.f32 %v939_v27, %v939_v27  ;;  %v988_v6 = vmul.f32 %v940_v40, %v940_v40  ;;  %v993_v63 = vmul.f32 %v945_v41, %v945_v41 }
 0x122   :  { %2308 = vrsqrt.f32 %v3110_v39  ;;  %v974_v10 = vsub.f32 %v2806_v26, %v957_v57  ;;  %v942_v13 = vsub.f32 %v2810_v29, %v922_v28  ;;  %v941_v8 = vsub.f32 %v2800_v22, %v922_v28 }
 0x123   :  { %2310 = vrsqrt.f32 %v3112_v30  ;;  %v3133_v7 = vadd.f32 %v1003_v46, %v987_v0  ;;  %v3135_v45 = vadd.f32 %v1004_v18, %v988_v6  ;;  %vm1137_vm4 = vcmp.eq.f32.partialorder %v3029_v49, 0.0 }
 0x124   :  { %vm1144_vm5 = vcmp.eq.f32.partialorder %v3035_v51, 0.0  ;;  %v1010_v19 = vmul.f32 %v978_v58, %v978_v58  ;;  %v994_v14 = vmul.f32 %v946_v59, %v946_v59  ;;  %v617_v15 = vmul.f32 %v2927_v44, %v2862_v33 }
 0x125   :  { %v1125_v26 = vsel %vm1123_vm15, %v1124_v36, %v1122_v53  ;;  %v1129_v22 = vsel %vm1128_vm0, %v3007_v4, %v1127_v35  ;;  %v1134_v29 = vmul.f32 %v2293_v43, %v3029_v49  ;;  %vm1093_vm6 = vcmp.eq.f32.partialorder %v3072_v38, inf  ;;  %v2297_v28 = vpop.eup %2296 }
 0x126   :  { %2312 = vrsqrt.f32 %v3133_v7  ;;  %v2504_v57 = vmov 0.0   ;;  %v1141_v44 = vmul.f32 %v2295_v54, %v3035_v51  ;;  %v1006_v12 = vmul.f32 %v974_v10, %v974_v10  ;;  %v3157_v43 = vpop.eup %2298 }
 0x127   :  { %773 = vmatprep.mubr.f32.mxu1 %v2504_v57  ;;  %v990_v41 = vmul.f32 %v942_v13, %v942_v13  ;;  %2314 = vrsqrt.f32 %v3135_v45  ;;  %v3154_v17 = vadd.f32 %v1009_v16, %v993_v63  ;;  %v1005_v36 = vmul.f32 %v973_v42, %v973_v42  ;;  %v3167_v40 = vpop.eup %2300 }
 0x128   :  { %v989_v35 = vmul.f32 %v941_v8, %v941_v8  ;;  %vm618_vm7 = vcmp.eq.f32.partialorder %v2862_v33, inf  ;;  %2316 = vpow2.f32 %v657_v5  ;;  %v1132_v46 = vsel %vm1130_vm1, %v1131_v47, %v1129_v22 }
 0x129   :  { %vm1095_vm8 = vcmp.eq.f32.partialorder %v3072_v38, 0.0  ;;  %v3164_v18 = vadd.f32 %v1010_v19, %v994_v14  ;;  %v619_v27 = vsel %vm618_vm7, %v2862_v33, %v617_v15  ;;  %2318 = vpow2.f32 %v659_v31  ;;  %v2303_v58 = vpop.eup %2302 }
 0x12a   :  { %v1136_v54 = vsel %vm1135_vm2, %v3029_v49, %v1134_v29  ;;  %v1159_v53 = vmul.f32 -10.0, %v1125_v26  ;;  %v621_v5 = vand.u32 2147483648, %v2862_v33  ;;  %v1143_v4 = vsel %vm1142_vm3, %v3035_v51, %v1141_v44  ;;  %v2305_v16 = vpop.eup %2304 }
 0x12b   :  { %v1092_v47 = vmul.f32 %v2297_v28, %v3072_v38  ;;  %v3177_v59 = vadd.f32 %v1006_v12, %v990_v41  ;;  %vm620_vm9 = vcmp.eq.f32.partialorder %v2862_v33, 0.0  ;;  %v1160_v31 = vmul.f32 -10.0, %v1132_v46 }
 0x12c   :  { %2320 = vrsqrt.f32 %v3154_v17  ;;  %v3181_v42 = vadd.f32 %v1005_v36, %v989_v35  ;;  %v622_v0 = vsel %vm620_vm9, %v621_v5, %v619_v27  ;;  %v1096_v6 = vand.u32 2147483648, %v3072_v38  ;;  %v2307_v63 = vpop.eup %2306 }
 0x12d   :  { %vm1100_vm10 = vcmp.eq.f32.partialorder %v3088_v60, inf  ;;  %vm1102_vm11 = vcmp.eq.f32.partialorder %v3088_v60, 0.0  ;;  %2322 = vrsqrt.f32 %v3164_v18  ;;  %v1139_v33 = vsel %vm1137_vm4, %v1138_v48, %v1136_v54 }
 0x12e   :  { %v1146_v10 = vsel %vm1144_vm5, %v1145_v55, %v1143_v4  ;;  %v1187_v13 = vmul.f32 1.442695, %v1159_v53  ;;  %v1099_v8 = vmul.f32 %v2303_v58, %v3088_v60  ;;  %v1094_v19 = vsel %vm1093_vm6, %v3072_v38, %v1092_v47 }
 0x12f   :  { %v1106_v14 = vmul.f32 %v2305_v16, %v3090_v61  ;;  %2324 = vrsqrt.f32 %v3177_v59  ;;  %v650_v15 = vmul.f32 -10.0, %v622_v0  ;;  %v2309_v26 = vpop.eup %2308  ;;  %v1189_v49 = vmul.f32 1.442695, %v1160_v31 }
 0x130   :  { %v1103_v48 = vand.u32 2147483648, %v3088_v60  ;;  %vm1107_vm12 = vcmp.eq.f32.partialorder %v3090_v61, inf  ;;  %2326 = vrsqrt.f32 %v3181_v42  ;;  %v2311_v51 = vpop.eup %2310  ;;  %v3204_v55 = vmul.f32 -10.0, %v1139_v33 }
 0x131   :  { %vm1109_vm13 = vcmp.eq.f32.partialorder %v3090_v61, 0.0  ;;  %v1110_v22 = vand.u32 2147483648, %v3090_v61  ;;  %v679_v29 = vmul.f32 1.442695, %v650_v15  ;;  %v3208_v28 = vmul.f32 -10.0, %v1146_v10 }
 0x132   :  { %2328 = vpow2.f32 %v1187_v13  ;;  %v1097_v44 = vsel %vm1095_vm8, %v1096_v6, %v1094_v19  ;;  %v1101_v12 = vsel %vm1100_vm10, %v3088_v60, %v1099_v8  ;;  %v1108_v36 = vsel %vm1107_vm12, %v3090_v61, %v1106_v14 }
 0x133   :  { %v2313_v41 = vpop.eup %2312  ;;  %vm1114_vm14 = vcmp.eq.f32.partialorder %v3099_v20, inf  ;;  %v1064_v35 = vmul.f32 %v2309_v26, %v3110_v39  ;;  %2330 = vpow2.f32 %v679_v29  ;;  %v1117_v27 = vand.u32 2147483648, %v3099_v20 }
 0x134   :  { %v2315_v46 = vpop.eup %2314  ;;  %2332 = vpow2.f32 %v1189_v49  ;;  %vm1065_vm15 = vcmp.eq.f32.partialorder %v3110_v39, inf  ;;  %v1071_v38 = vmul.f32 %v2311_v51, %v3112_v30  ;;  %v1104_v54 = vsel %vm1102_vm11, %v1103_v48, %v1101_v12 }
 0x135   :  { %vm1116_vm0 = vcmp.eq.f32.partialorder %v3099_v20, 0.0  ;;  %v1155_v53 = vmul.f32 -10.0, %v1097_v44  ;;  %vm1067_vm1 = vcmp.eq.f32.partialorder %v3110_v39, 0.0  ;;  %v1043_v5 = vmul.f32 %v2315_v46, %v3135_v45  ;;  %v3226_v58 = vpop.eup %2316 }
 0x136   :  { %v1111_v4 = vsel %vm1109_vm13, %v1110_v22, %v1108_v36  ;;  %v1068_v47 = vand.u32 2147483648, %v3110_v39  ;;  %vm1072_vm2 = vcmp.eq.f32.partialorder %v3112_v30, inf  ;;  %v1036_v16 = vmul.f32 %v2313_v41, %v3133_v7  ;;  %v3233_v60 = vpop.eup %2318  ;;  %v685_v22 = vld [vmem:[#allocation11] sm:$0x3] }
 0x137   :  { %v1113_v31 = vmul.f32 %v2307_v63, %v3099_v20  ;;  %v1066_v0 = vsel %vm1065_vm15, %v3110_v39, %v1064_v35  ;;  %vm1074_vm3 = vcmp.eq.f32.partialorder %v3112_v30, 0.0  ;;  %v1075_v6 = vand.u32 2147483648, %v3112_v30  ;;  %v686_v39 = vld [vmem:[#allocation9] sm:$0x3] }
 0x138   :  { %v1156_v33 = vmul.f32 -10.0, %v1104_v54  ;;  %v1073_v61 = vsel %vm1072_vm2, %v3112_v30, %v1071_v38  ;;  %vm1079_vm4 = vcmp.eq.f32.partialorder %v3154_v17, inf  ;;  %vm1044_vm5 = vcmp.eq.f32.partialorder %v3135_v45, inf }
 0x139   :  { %v2321_v10 = vpop.eup %2320  ;;  %v3242_v13 = vmul.f32 -10.0, %v1111_v4  ;;  %v1179_v8 = vmul.f32 1.442695, %v1155_v53  ;;  %vm1037_vm6 = vcmp.eq.f32.partialorder %v3133_v7, inf  ;;  %v1045_v63 = vsel %vm1044_vm5, %v3135_v45, %v1043_v5 }
 0x13a   :  { %v2323_v19 = vpop.eup %2322  ;;  %v1069_v14 = vsel %vm1067_vm1, %v1068_v47, %v1066_v0  ;;  %vm1081_vm7 = vcmp.eq.f32.partialorder %v3154_v17, 0.0  ;;  %v1038_v15 = vsel %vm1037_vm6, %v3133_v7, %v1036_v16  ;;  %v1047_v26 = vand.u32 2147483648, %v3135_v45 }
 0x13b   :  { %v1115_v49 = vsel %vm1114_vm14, %v3099_v20, %v1113_v31  ;;  %v1076_v48 = vsel %vm1074_vm3, %v1075_v6, %v1073_v61  ;;  %v1040_v51 = vand.u32 2147483648, %v3133_v7  ;;  %vm1046_vm8 = vcmp.eq.f32.partialorder %v3135_v45, 0.0 }
 0x13c   :  { %v2325_v29 = vpop.eup %2324  ;;  %v1078_v44 = vmul.f32 %v2321_v10, %v3154_v17  ;;  %v1082_v12 = vand.u32 2147483648, %v3154_v17  ;;  %vm1039_vm9 = vcmp.eq.f32.partialorder %v3133_v7, 0.0  ;;  %v1048_v41 = vsel %vm1046_vm8, %v1047_v26, %v1045_v63 }
 0x13d   :  { %v2327_v36 = vpop.eup %2326  ;;  %v1181_v35 = vmul.f32 1.442695, %v1156_v33  ;;  %v1085_v46 = vmul.f32 %v2323_v19, %v3164_v18  ;;  %v1151_v30 = vmul.f32 -10.0, %v1069_v14  ;;  %v1041_v38 = vsel %vm1039_vm9, %v1040_v51, %v1038_v15 }
 0x13e   :  { %v1118_v54 = vsel %vm1116_vm0, %v1117_v27, %v1115_v49  ;;  %v1152_v45 = vmul.f32 -10.0, %v1076_v48  ;;  %vm691_vm10 = vcmask 1040384   ;;  %v687_v53 = vsub.f32 %v685_v22, %v686_v39 }
 0x13f   :  { %v3264_v5 = vpop.eup %2328  ;;  %2334 = vpow2.f32 %v1179_v8  ;;  %vm1086_vm11 = vcmp.eq.f32.partialorder %v3164_v18, inf  ;;  %v1057_v7 = vmul.f32 %v2325_v29, %v3177_v59  ;;  %v1148_v4 = vmul.f32 -10.0, %v1048_v41 }
 0x140   :  { %v2331_v47 = vpop.eup %2330  ;;  %v1080_v16 = vsel %vm1079_vm4, %v3154_v17, %v1078_v44  ;;  %vm1088_vm12 = vcmp.eq.f32.partialorder %v3164_v18, 0.0  ;;  %v1050_v20 = vmul.f32 %v2327_v36, %v3181_v42  ;;  %v1147_v27 = vmul.f32 -10.0, %v1041_v38 }
 0x141   :  { %v3273_v31 = vpop.eup %2332  ;;  %v1158_v0 = vmul.f32 -10.0, %v1118_v54  ;;  %v1087_v6 = vsel %vm1086_vm11, %v3164_v18, %v1085_v46  ;;  %v1089_v33 = vand.u32 2147483648, %v3164_v18  ;;  %v1171_v61 = vmul.f32 1.442695, %v1151_v30  ;;  %2151 = vmatprep.subr.msk.mxu1 %vm691_vm10, %v2331_v47 }
 0x142   :  { %2336 = vpow2.f32 %v1181_v35  ;;  %v1173_v10 = vmul.f32 1.442695, %v1152_v45  ;;  %vm1058_vm13 = vcmp.eq.f32.partialorder %v3177_v59, inf  ;;  %2152 = vmatpush1.msk.msra.mxu1 %vm691_vm10, %v2988_v52  ;;  %v689_v8 = vrot.slane %v687_v53, 7  ;;  %v3329_v45 = vld [vmem:[%s3388_s0] sm:$0x3] }
 0x143   :  { %v1083_v63 = vsel %vm1081_vm7, %v1082_v12, %v1080_v16  ;;  %vm1051_vm14 = vcmp.eq.f32.partialorder %v3181_v42, inf  ;;  %v1059_v19 = vsel %vm1058_vm13, %v3177_v59, %v1057_v7  ;;  %v1165_v14 = vmul.f32 1.442695, %v1148_v4  ;;  %735 = vmatprep.subr.mxu1 %v3031_v50 }
 0x144   :  { %v1090_v15 = vsel %vm1088_vm12, %v1089_v33, %v1087_v6  ;;  %v1052_v26 = vsel %vm1051_vm14, %v3181_v42, %v1050_v20  ;;  %v1061_v49 = vand.u32 2147483648, %v3177_v59  ;;  %v1163_v48 = vmul.f32 1.442695, %v1147_v27  ;;  %736 = vmatpush1.msra.mxu1 %v3009_v37 }
 0x145   :  { %2338 = vpow2.f32 %v1171_v61  ;;  %vm1053_vm15 = vcmp.eq.f32.partialorder %v3181_v42, 0.0  ;;  %v1054_v52 = vand.u32 2147483648, %v3181_v42  ;;  %vm1060_vm0 = vcmp.eq.f32.partialorder %v3177_v59, 0.0  ;;  %737 = vmatprep.subr.mxu1 %v3068_v21 }
 0x146   :  { %2340 = vpow2.f32 %v1173_v10  ;;  %v1062_v50 = vsel %vm1060_vm0, %v1061_v49, %v1059_v19  ;;  %738 = vmatpush1.msra.mxu1 %v3057_v11  ;;  %v692_v17 = vsel %vm691_vm10, 1.0, %v689_v8  ;;  %vm693_vm1 = vcmask 203776  }
 0x147   :  { %v1193_v18 = vmul.f32 1.442695, %v3208_v28  ;;  %v1154_v51 = vmul.f32 -10.0, %v1090_v15  ;;  %v1055_v37 = vsel %vm1053_vm15, %v1054_v52, %v1052_v26  ;;  %2342 = vpow2.f32 %v1165_v14  ;;  %739 = vmatprep.subr.mxu1 %v3167_v40 }
 0x148   :  { %v1191_v42 = vmul.f32 1.442695, %v3204_v55  ;;  %v1153_v22 = vmul.f32 -10.0, %v1083_v63  ;;  %2344 = vpow2.f32 %v1163_v48  ;;  %740 = vmatpush1.msra.mxu1 %v3157_v43  ;;  %v1185_v21 = vmul.f32 1.442695, %v1158_v0 }
 0x149   :  { %v1150_v59 = vmul.f32 -10.0, %v1062_v50  ;;  %2153 = vmatmul.mubr.msk.f32.vlgmr.msra.gmra.mxu1 %vm693_vm1, %v692_v17  ;;  %2154 = vmatprep.subr.msk.mxu1 %vm691_vm10, %v3003_v25  ;;  %v1183_v11 = vmul.f32 1.442695, %v3242_v13  ;;  %v1149_v28 = vmul.f32 -10.0, %v1055_v37  ;;  %2346 = vpow2.f32 %v1193_v18  ;;  %v1196_v43 = vld [vmem:[#allocation11 + $0x2] sm:$0x3] }
 0x14a   :  { %2155 = vmatpush1.msk.msra.mxu1 %vm691_vm10, %v2992_v62  ;;  %844 = vmatprep.mubr.f32.mxu1 %v2504_v57  ;;  %v1177_v40 = vmul.f32 1.442695, %v1154_v51  ;;  %v1198_v55 = vld [vmem:[#allocation9 + $0x2] sm:$0x3]  ;;  %2348 = vpow2.f32 %v1191_v42  ;;  %v1175_v29 = vmul.f32 1.442695, %v1153_v22 }
 0x14b   :  { %806 = vmatprep.subr.mxu1 %v3049_v9  ;;  %2350 = vpow2.f32 %v1185_v21  ;;  %v1169_v25 = vmul.f32 1.442695, %v1150_v59  ;;  %v1167_v13 = vmul.f32 1.442695, %v1149_v28  ;;  %v1199_v62 = vsub.f32 %v1196_v43, %v1198_v55 }
 0x14c   :  { %v2335_v39 = vpop.eup %2334  ;;  %807 = vmatpush1.msra.mxu1 %v3038_v56  ;;  %2352 = vpow2.f32 %v1183_v11  ;;  %v2505_v27 = vmov 1983009808   ;;  %vm901_vm2 = vcmask 1042434   ;;  %vm903_vm4 = vcmask 1044484  }
 0x14d   :  { %808 = vmatprep.subr.mxu1 %v3101_v34  ;;  %2354 = vpow2.f32 %v1177_v40  ;;  %v1201_v9 = vrot.slane %v1199_v62, 7  ;;  %vm902_vm3 = vmor %vm691_vm10, %vm901_vm2  ;;  %vm905_vm6 = vcmask 1046534  }
 0x14e   :  { %809 = vmatpush1.msra.mxu1 %v3074_v32  ;;  %2356 = vpow2.f32 %v1175_v29  ;;  %vm904_vm5 = vmor %vm902_vm3, %vm903_vm4 }
 0x14f   :  { %v2337_v44 = vpop.eup %2336  ;;  %810 = vmatprep.subr.mxu1 %v3233_v60  ;;  %2358 = vpow2.f32 %v1169_v25  ;;  %vm3337_vm7 = vmor %vm904_vm5, %vm905_vm6  ;;  %v2378_v25 = vld [vmem:[%s3389_s1] sm:$0xff] }
 0x150   :  { %811 = vmatpush1.msra.mxu1 %v3226_v58  ;;  %2360 = vpow2.f32 %v1167_v13  ;;  %v1203_v58 = vsel %vm691_vm10, 1.0, %v1201_v9 }
 0x151   :  { %2156 = vmatmul.mubr.msk.f32.vlgmr.msra.gmra.mxu1 %vm693_vm1, %v692_v17  ;;  %2162 = vmatprep.subr.msk.mxu1 %vm691_vm10, %v3273_v31  ;;  %v886_v31 = vunpack.c.l.s4 %v2505_v27 }
 0x152   :  { %v2339_v56 = vpop.eup %2338  ;;  %2163 = vmatpush1.msk.msra.mxu1 %vm691_vm10, %v3264_v5  ;;  %1283 = vmatprep.mubr.f32.mxu1 %v2504_v57 }
 0x153   :  { %v2341_v32 = vpop.eup %2340  ;;  %1245 = vmatprep.subr.mxu1 %v2337_v44  ;;  %v887_v10 = vunpack.c.0.s8 %v886_v31 }
 0x154   :  { %v2343_v34 = vpop.eup %2342  ;;  %1246 = vmatpush1.msra.mxu1 %v2335_v39 }
 0x155   :  { %v2345_v60 = vpop.eup %2344  ;;  %1247 = vmatprep.subr.mxu1 %v2341_v32  ;;  %v890_v49 = vsub.s32 %v887_v10, %v2772_v1 }
 0x156   :  { %1248 = vmatpush1.msra.mxu1 %v2339_v56  ;;  %v2347_v12 = vpop.eup %2346 }
 0x157   :  { %1249 = vmatprep.subr.mxu1 %v2343_v34  ;;  %v2349_v41 = vpop.eup %2348 }
 0x158   :  { %1250 = vmatpush1.msra.mxu1 %v2345_v60  ;;  %v2351_v36 = vpop.eup %2350 }
 0x159   :  { %2164 = vmatmul.mubr.msk.f32.vlgmr.msra.gmra.mxu1 %vm693_vm1, %v1203_v58  ;;  %2165 = vmatprep.subr.msk.mxu1 %vm691_vm10, %v2347_v12  ;;  %v2353_v35 = vpop.eup %2352 }
 0x15a   :  { %2166 = vmatpush1.msk.msra.mxu1 %vm691_vm10, %v2349_v41  ;;  %1354 = vmatprep.mubr.f32.mxu1 %v2504_v57  ;;  %v2355_v46 = vpop.eup %2354 }
 0x15b   :  { %1316 = vmatprep.subr.mxu1 %v2351_v36  ;;  %v2357_v30 = vpop.eup %2356 }
 0x15c   :  { %1317 = vmatpush1.msra.mxu1 %v2353_v35  ;;  %v2359_v38 = vpop.eup %2358 }
 0x15d   :  { %1318 = vmatprep.subr.mxu1 %v2355_v46  ;;  %v2361_v54 = vpop.eup %2360 }
 0x15e   :  { %1319 = vmatpush1.msra.mxu1 %v2357_v30 }
 0x15f   :  { %1320 = vmatprep.subr.mxu1 %v2359_v38 }
 0x160   :  { %1321 = vmatpush1.msra.mxu1 %v2361_v54 }
 0x161   :  { %2167 = vmatmul.mubr.msk.f32.vlgmr.msra.gmra.mxu1 %vm693_vm1, %v1203_v58 }
 0x209   :  { %v775_v53 = vpop.f32.mrf.mxu1 }
 0x20b   :  { %v777_v5 = vpop.f32.mrf.mxu1 }
 0x20c   :  { %2362 = vrcp.f32 %v777_v5 }
 0x20d   :  { %2364 = vrcp.f32 %v775_v53 }
 0x211   :  { %v846_v7 = vpop.f32.mrf.mxu1 }
 0x212   :  { %2366 = vrcp.f32 %v846_v7 }
 0x213   :  { %v848_v4 = vpop.f32.mrf.mxu1 }
 0x214   :  { %2368 = vrcp.f32 %v848_v4 }
 0x219   :  { %v2363_v47 = vpop.eup %2362  ;;  %v1285_v16 = vpop.f32.mrf.mxu1 }
 0x21a   :  { %v2365_v20 = vpop.eup %2364  ;;  %v866_v6 = vrot.slane %v2363_v47, %v2778_v3 }
 0x21b   :  { %v1287_v0 = vpop.f32.mrf.mxu1  ;;  %v862_v33 = vrot.slane %v2365_v20, %v2778_v3 }
 0x21c   :  { %2370 = vrcp.f32 %v1287_v0  ;;  %v876_v8 = vmul.f32 %v866_v6, %v777_v5 }
 0x21d   :  { %2372 = vrcp.f32 %v1285_v16  ;;  %v875_v15 = vmul.f32 %v862_v33, %v775_v53 }
 0x21f   :  { %v2367_v61 = vpop.eup %2366  ;;  %v883_v52 = vcombine.low %v875_v15, %v876_v8 }
 0x220   :  { %v870_v63 = vrot.slane %v2367_v61, %v2778_v3 }
 0x221   :  { %v2369_v19 = vpop.eup %2368  ;;  %v1356_v14 = vpop.f32.mrf.mxu1  ;;  %v891_v51 = vrot.slane %v883_v52, %v890_v49 }
 0x222   :  { %v874_v26 = vrot.slane %v2369_v19, %v2778_v3  ;;  %2374 = vrcp.f32 %v1356_v14  ;;  %v877_v50 = vmul.f32 %v870_v63, %v846_v7 }
 0x223   :  { %v1358_v48 = vpop.f32.mrf.mxu1 }
 0x224   :  { %v878_v17 = vmul.f32 %v874_v26, %v848_v4  ;;  %2376 = vrcp.f32 %v1358_v48 }
 0x226   :  { %v884_v18 = vcombine.low %v877_v50, %v878_v17 }
 0x228   :  { %v898_v37 = vrot.slane %v884_v18, %v890_v49 }
 0x229   :  { %v2371_v42 = vpop.eup %2370 }
 0x22a   :  { %v899_v22 = vcombine.low %v891_v51, %v898_v37  ;;  %v900_v21 = vcombine.high %v891_v51, %v898_v37  ;;  %v2373_v59 = vpop.eup %2372  ;;  %v1376_v43 = vrot.slane %v2371_v42, %v2778_v3 }
 0x22b   :  { %v1372_v39 = vrot.slane %v2373_v59, %v2778_v3 }
 0x22c   :  { %v2157_v28 = vrot.slane %v899_v22, 9  ;;  %v909_v40 = vrot.slane %v900_v21, 7  ;;  %v1386_v62 = vmul.f32 %v1376_v43, %v1287_v0 }
 0x22d   :  { %v1385_v9 = vmul.f32 %v1372_v39, %v1285_v16 }
 0x22e   :  { %v910_v55 = vsel %vm3337_vm7, %v2157_v28, %v909_v40 }
 0x22f   :  { %v2375_v29 = vpop.eup %2374  ;;  %v912_v13 = vadd.f32 %v2378_v25, %v910_v55  ;;  %v1393_v34 = vcombine.low %v1385_v9, %v1386_v62 }
 0x230   :  { %v1380_v44 = vrot.slane %v2375_v29, %v2778_v3 }
 0x231   :  { %v2377_v56 = vpop.eup %2376  ;;  %913 = vst [vmem:[%s3400_s12] sm:$0xff] %v912_v13  ;;  %v1401_v41 = vrot.slane %v1393_v34, %v890_v49 }
 0x232   :  { %v1384_v32 = vrot.slane %v2377_v56, %v2778_v3  ;;  %v1387_v60 = vmul.f32 %v1380_v44, %v1356_v14 }
 0x234   :  { %v1388_v58 = vmul.f32 %v1384_v32, %v1358_v48 }
 0x236   :  { %v1394_v12 = vcombine.low %v1387_v60, %v1388_v58 }
 0x238   :  { %v1408_v36 = vrot.slane %v1394_v12, %v890_v49 }
 0x23a   :  { %v1409_v35 = vcombine.low %v1401_v41, %v1408_v36  ;;  %v1410_v46 = vcombine.high %v1401_v41, %v1408_v36 }
 0x23c   :  { %v2168_v30 = vrot.slane %v1409_v35, 9  ;;  %v1413_v38 = vrot.slane %v1410_v46, 7 }
 0x23e   :  { %v1414_v54 = vsel %vm3337_vm7, %v2168_v30, %v1413_v38 }
 0x23f   :  { %v1416_v53 = vadd.f32 %v2378_v25, %v1414_v54 }
 0x241   :  { %2169 = vst [vmem:[%s3400_s12 + $0x8] sm:$0xff] %v1416_v53 }
 0x242   :  { %2483 = dma.done.wait [#allocation8], 6656 }
 0x243   :  { %2484 = vsyncadd [#allocation8], 4294960640 }
 0x244   :  { %2485 = dma.done.wait [#allocation8 + $0x1], 64 }
 0x245   :  { %2486 = vsyncadd [#allocation8 + $0x1], 4294967232  ;;  %1582 = vmatprep.mubr.f32.mxu0 %v2504_v57  ;;  %1653 = vmatprep.mubr.f32.mxu1 %v2504_v57  ;;  %vm1505_vm8 = vcmask 1043456   ;;  %v1476_v5 = vld [vmem:[#allocation2 + $0x150] sm:$0xf]  ;;  %v1472_v16 = vld [vmem:[#allocation2 + $0x28] sm:$0xff] }
 0x246   :  { %v1478_v7 = vld [vmem:[#allocation2 + $0x70] sm:$0xf]  ;;  %v1475_v4 = vld [vmem:[#allocation2 + $0x98] sm:$0xf]  ;;  %2170 = vmatprep.subr.msk.mxu0 %vm1505_vm8, %v1476_v5  ;;  %v1477_v47 = vld [vmem:[#allocation2 + $0xe8] sm:$0xf] }
 0x247   :  { %2173 = vmatprep.subr.msk.mxu1 %vm1505_vm8, %v1478_v7  ;;  %v1474_v20 = vld [vmem:[#allocation2 + $0x80] sm:$0xff]  ;;  %2171 = vmatpush1.msk.msra.mxu0 %vm1505_vm8, %v1475_v4  ;;  %v1471_v27 = vld [vmem:[#allocation2 + $0xf8] sm:$0xff]  ;;  %v1473_v31 = vld [vmem:[#allocation2 + $0x8] sm:$0xff]  ;;  %vm1501_vm9 = vcmask 818176  }
 0x248   :  { %2174 = vmatpush1.msk.msra.mxu1 %vm1505_vm8, %v1477_v47  ;;  %v1468_v0 = vld [vmem:[#allocation2 + $0x68] sm:$0xff]  ;;  %1526 = vmatprep.subr.mxu0 %v1472_v16  ;;  %v1467_v33 = vld [vmem:[#allocation2 + $0x198] sm:$0xff]  ;;  %v1469_v61 = vld [vmem:[#allocation2 + $0x30] sm:$0xff] }
 0x249   :  { %1597 = vmatprep.subr.mxu1 %v1474_v20  ;;  %v1470_v6 = vld [vmem:[#allocation2 + $0xc8] sm:$0xff]  ;;  %1527 = vmatpush1.msra.mxu0 %v1471_v27  ;;  %v1464_v57 = vld [vmem:[#allocation2 + $0x18] sm:$0xff]  ;;  %v1466_v10 = vld [vmem:[#allocation2 + $0x120] sm:$0xff] }
 0x24a   :  { %1598 = vmatpush1.msra.mxu1 %v1473_v31  ;;  %1528 = vmatprep.subr.mxu0 %v1468_v0  ;;  %v1463_v8 = vld [vmem:[#allocation2 + $0x60] sm:$0xff]  ;;  %v1465_v63 = vld [vmem:[#allocation2 + $0x158] sm:$0xff]  ;;  %v1460_v19 = vld [vmem:[#allocation2 + $0x168] sm:$0xff] }
 0x24b   :  { %1599 = vmatprep.subr.mxu1 %v1470_v6  ;;  %1529 = vmatpush1.msra.mxu0 %v1467_v33  ;;  %v1462_v14 = vld [vmem:[#allocation2 + $0x38] sm:$0xff]  ;;  %v1459_v15 = vld [vmem:[#allocation2 + $0x50] sm:$0xff]  ;;  %v1458_v48 = vld [vmem:[#allocation2 + $0x140] sm:$0xff] }
 0x24c   :  { %1600 = vmatpush1.msra.mxu1 %v1469_v61  ;;  %1530 = vmatprep.subr.mxu0 %v1464_v57  ;;  %v1461_v26 = vld [vmem:[#allocation2 + $0x190] sm:$0xff]  ;;  %v1455_v52 = vld [vmem:[#allocation2 + $0xb8] sm:$0xff]  ;;  %v1457_v50 = vld [vmem:[#allocation2 + $0xc0] sm:$0xff] }
 0x24d   :  { %1601 = vmatprep.subr.mxu1 %v1466_v10  ;;  %1531 = vmatpush1.msra.mxu0 %v1463_v8  ;;  %v1456_v49 = vld [vmem:[#allocation2 + $0x170] sm:$0xff]  ;;  %v1452_v17 = vld [vmem:[#allocation2 + $0x188] sm:$0xff]  ;;  %v1448_v42 = vld [vmem:[#allocation2] sm:$0xff] }
 0x24e   :  { %1602 = vmatpush1.msra.mxu1 %v1465_v63  ;;  %1532 = vmatprep.subr.mxu0 %v1460_v19  ;;  %v1454_v18 = vld [vmem:[#allocation2 + $0x88] sm:$0xff]  ;;  %v1451_v51 = vld [vmem:[#allocation2 + $0xf0] sm:$0xff]  ;;  %v1450_v22 = vld [vmem:[#allocation2 + $0xe0] sm:$0xff] }
 0x24f   :  { %1603 = vmatprep.subr.mxu1 %v1462_v14  ;;  %1533 = vmatpush1.msra.mxu0 %v1459_v15  ;;  %v1453_v37 = vld [vmem:[#allocation2 + $0xa8] sm:$0xff]  ;;  %v1447_v21 = vld [vmem:[#allocation2 + $0xa0] sm:$0xff]  ;;  %v1444_v11 = vld [vmem:[#allocation2 + $0x130] sm:$0xff] }
 0x250   :  { %1604 = vmatpush1.msra.mxu1 %v1461_v26  ;;  %1534 = vmatprep.subr.mxu0 %v1456_v49  ;;  %v1449_v59 = vld [vmem:[#allocation2 + $0x20] sm:$0xff]  ;;  %v1446_v28 = vld [vmem:[#allocation2 + $0x78] sm:$0xff]  ;;  %v1439_v29 = vld [vmem:[#allocation2 + $0x148] sm:$0xff] }
 0x251   :  { %1605 = vmatprep.subr.mxu1 %v1458_v48  ;;  %1535 = vmatpush1.msra.mxu0 %v1455_v52  ;;  %v1443_v40 = vld [vmem:[#allocation2 + $0x180] sm:$0xff]  ;;  %v1445_v43 = vld [vmem:[#allocation2 + $0x138] sm:$0xff]  ;;  %v1436_v13 = vld [vmem:[#allocation2 + $0x110] sm:$0xff] }
 0x252   :  { %1606 = vmatpush1.msra.mxu1 %v1457_v50  ;;  %1536 = vmatprep.subr.mxu0 %v1452_v17  ;;  %v1440_v55 = vld [vmem:[#allocation2 + $0x100] sm:$0xff]  ;;  %v1442_v39 = vld [vmem:[#allocation2 + $0xd8] sm:$0xff]  ;;  %v1435_v44 = vld [vmem:[#allocation2 + $0x108] sm:$0xff] }
 0x253   :  { %1607 = vmatprep.subr.mxu1 %v1454_v18  ;;  %1537 = vmatpush1.msra.mxu0 %v1451_v51  ;;  %v1441_v25 = vld [vmem:[#allocation2 + $0x58] sm:$0xff]  ;;  %v1437_v56 = vld [vmem:[#allocation2 + $0x90] sm:$0xff]  ;;  %v1432_v9 = vld [vmem:[#allocation2 + $0x128] sm:$0xff] }
 0x254   :  { %1608 = vmatpush1.msra.mxu1 %v1453_v37  ;;  %1538 = vmatprep.subr.mxu0 %v1448_v42  ;;  %v1438_v62 = vld [vmem:[#allocation2 + $0x118] sm:$0xff]  ;;  %v1431_v34 = vld [vmem:[#allocation2 + $0x160] sm:$0xff]  ;;  %v1428_v58 = vld [vmem:[#allocation2 + $0xd0] sm:$0xff] }
 0x255   :  { %1609 = vmatprep.subr.mxu1 %v1450_v22  ;;  %1539 = vmatpush1.msra.mxu0 %v1447_v21  ;;  %v1434_v32 = vld [vmem:[#allocation2 + $0x178] sm:$0xff]  ;;  %v1433_v60 = vld [vmem:[#allocation2 + $0x40] sm:$0xff]  ;;  %v1430_v12 = vld [vmem:[#allocation2 + $0x48] sm:$0xff] }
 0x256   :  { %1610 = vmatpush1.msra.mxu1 %v1449_v59  ;;  %1540 = vmatprep.subr.mxu0 %v1444_v11  ;;  %v1427_v41 = vld [vmem:[#allocation2 + $0xb0] sm:$0xff]  ;;  %v1479_v35 = vld [vmem:[#allocation3] sm:$0xf] }
 0x257   :  { %1611 = vmatprep.subr.mxu1 %v1446_v28  ;;  %1541 = vmatpush1.msra.mxu0 %v1443_v40  ;;  %v1429_v36 = vld [vmem:[#allocation2 + $0x10] sm:$0xff]  ;;  %v1484_v46 = vrot.slane %v1479_v35, %v2778_v3  ;;  %v1492_v30 = vrot.slane %v1479_v35, %v343_v24  ;;  %v1488_v38 = vrot.slane %v1479_v35, %v2775_v2 }
 0x258   :  { %1612 = vmatpush1.msra.mxu1 %v1445_v43  ;;  %1542 = vmatprep.subr.mxu0 %v1440_v55  ;;  %v1496_v54 = vrot.slane %v1479_v35, %v415_v23 }
 0x259   :  { %1613 = vmatprep.subr.mxu1 %v1442_v39  ;;  %1543 = vmatpush1.msra.mxu0 %v1439_v29 }
 0x25a   :  { %1614 = vmatpush1.msra.mxu1 %v1441_v25  ;;  %1544 = vmatprep.subr.mxu0 %v1436_v13 }
 0x25b   :  { %1615 = vmatprep.subr.mxu1 %v1438_v62  ;;  %1545 = vmatpush1.msra.mxu0 %v1435_v44 }
 0x25c   :  { %1616 = vmatpush1.msra.mxu1 %v1437_v56  ;;  %1546 = vmatprep.subr.mxu0 %v1432_v9 }
 0x25d   :  { %1617 = vmatprep.subr.mxu1 %v1434_v32  ;;  %1547 = vmatpush1.msra.mxu0 %v1431_v34 }
 0x25e   :  { %1618 = vmatpush1.msra.mxu1 %v1433_v60  ;;  %1548 = vmatprep.subr.mxu0 %v1428_v58 }
 0x25f   :  { %1619 = vmatprep.subr.mxu1 %v1430_v12  ;;  %1549 = vmatpush1.msra.mxu0 %v1427_v41 }
 0x260   :  { %1620 = vmatpush1.msra.mxu1 %v1429_v36  ;;  %2172 = vmatmul.mubr.msk.f32.vlgmr.msra.gmra.mxu0 %vm1501_vm9, %v3329_v45 }
 0x261   :  { %2175 = vmatmul.mubr.msk.f32.vlgmr.msra.gmra.mxu1 %vm1501_vm9, %v3329_v45 }
 0x320   :  { %v1584_v53 = vpop.f32.mrf.mxu0 }
 0x321   :  { %v1655_v5 = vpop.f32.mrf.mxu1  ;;  %v3368_v7 = vadd.f32 %v1584_v53, %v1484_v46 }
 0x322   :  { %v3370_v4 = vadd.f32 %v1655_v5, %v1492_v30  ;;  %v1586_v47 = vpop.f32.mrf.mxu0 }
 0x323   :  { %v1657_v16 = vpop.f32.mrf.mxu1  ;;  %v1660_v45 = vmax.f32 %v3368_v7, 0.0  ;;  %v1587_v27 = vadd.f32 %v1586_v47, %v1488_v38 }
 0x324   :  { %v1662_v20 = vmax.f32 %v3370_v4, 0.0  ;;  %v1658_v31 = vadd.f32 %v1657_v16, %v1496_v54 }
 0x325   :  { %v1661_v24 = vmax.f32 %v1587_v27, 0.0 }
 0x326   :  { %v1663_v0 = vmax.f32 %v1658_v31, 0.0 }
 0x327   :  { %2487 = dma.done.wait [#allocation8 + $0x2], 16384 }
 0x328   :  { %2488 = vsyncadd [#allocation8 + $0x2], 4294950912 }
 0x329   :  { %2489 = dma.done.wait [#allocation8 + $0x3], 32 }
 0x32a   :  { %2490 = vsyncadd [#allocation8 + $0x3], 4294967264  ;;  %1875 = vmatprep.mubr.f32.mxu0 %v1661_v24  ;;  %1946 = vmatprep.mubr.f32.mxu1 %v1663_v0  ;;  %v1702_v1 = vld [vmem:[#allocation4 + $0xf8] sm:$0xff]  ;;  %v1701_v6 = vld [vmem:[#allocation4 + $0xf0] sm:$0xff] }
 0x32b   :  { %v1766_v23 = vld [vmem:[#allocation4 + $0x2f8] sm:$0xff]  ;;  %1811 = vmatprep.subr.mxu0 %v1702_v1  ;;  %v1765_v33 = vld [vmem:[#allocation4 + $0x2f0] sm:$0xff]  ;;  %v1700_v61 = vld [vmem:[#allocation4 + $0xe8] sm:$0xff] }
 0x32c   :  { %1882 = vmatprep.subr.mxu1 %v1766_v23  ;;  %v1764_v57 = vld [vmem:[#allocation4 + $0x2e8] sm:$0xff]  ;;  %1812 = vmatpush1.msra.mxu0 %v1701_v6  ;;  %v1699_v10 = vld [vmem:[#allocation4 + $0xe0] sm:$0xff]  ;;  %v1698_v63 = vld [vmem:[#allocation4 + $0xd8] sm:$0xff] }
 0x32d   :  { %1883 = vmatpush1.msra.mxu1 %v1765_v33  ;;  %v1763_v8 = vld [vmem:[#allocation4 + $0x2e0] sm:$0xff]  ;;  %1813 = vmatprep.subr.mxu0 %v1700_v61  ;;  %v1762_v19 = vld [vmem:[#allocation4 + $0x2d8] sm:$0xff]  ;;  %v1697_v14 = vld [vmem:[#allocation4 + $0xd0] sm:$0xff] }
 0x32e   :  { %1884 = vmatprep.subr.mxu1 %v1764_v57  ;;  %v1761_v15 = vld [vmem:[#allocation4 + $0x2d0] sm:$0xff]  ;;  %1814 = vmatpush1.msra.mxu0 %v1699_v10  ;;  %v1696_v26 = vld [vmem:[#allocation4 + $0xc8] sm:$0xff]  ;;  %v1695_v48 = vld [vmem:[#allocation4 + $0xc0] sm:$0xff] }
 0x32f   :  { %1885 = vmatpush1.msra.mxu1 %v1763_v8  ;;  %v1760_v49 = vld [vmem:[#allocation4 + $0x2c8] sm:$0xff]  ;;  %1815 = vmatprep.subr.mxu0 %v1698_v63  ;;  %v1759_v52 = vld [vmem:[#allocation4 + $0x2c0] sm:$0xff]  ;;  %v1694_v50 = vld [vmem:[#allocation4 + $0xb8] sm:$0xff] }
 0x330   :  { %1886 = vmatprep.subr.mxu1 %v1762_v19  ;;  %1816 = vmatpush1.msra.mxu0 %v1697_v14  ;;  %v1758_v17 = vld [vmem:[#allocation4 + $0x2b8] sm:$0xff]  ;;  %v1693_v18 = vld [vmem:[#allocation4 + $0xb0] sm:$0xff]  ;;  %v1692_v37 = vld [vmem:[#allocation4 + $0xa8] sm:$0xff] }
 0x331   :  { %1887 = vmatpush1.msra.mxu1 %v1761_v15  ;;  %1817 = vmatprep.subr.mxu0 %v1696_v26  ;;  %v1757_v51 = vld [vmem:[#allocation4 + $0x2b0] sm:$0xff]  ;;  %v1756_v42 = vld [vmem:[#allocation4 + $0x2a8] sm:$0xff]  ;;  %v1691_v22 = vld [vmem:[#allocation4 + $0xa0] sm:$0xff] }
 0x332   :  { %1888 = vmatprep.subr.mxu1 %v1760_v49  ;;  %1818 = vmatpush1.msra.mxu0 %v1695_v48  ;;  %v1755_v21 = vld [vmem:[#allocation4 + $0x2a0] sm:$0xff]  ;;  %v1690_v59 = vld [vmem:[#allocation4 + $0x98] sm:$0xff]  ;;  %v1689_v28 = vld [vmem:[#allocation4 + $0x90] sm:$0xff] }
 0x333   :  { %1889 = vmatpush1.msra.mxu1 %v1759_v52  ;;  %1819 = vmatprep.subr.mxu0 %v1694_v50  ;;  %v1754_v11 = vld [vmem:[#allocation4 + $0x298] sm:$0xff]  ;;  %v1753_v40 = vld [vmem:[#allocation4 + $0x290] sm:$0xff]  ;;  %v1688_v43 = vld [vmem:[#allocation4 + $0x88] sm:$0xff] }
 0x334   :  { %1890 = vmatprep.subr.mxu1 %v1758_v17  ;;  %1820 = vmatpush1.msra.mxu0 %v1693_v18  ;;  %v1752_v55 = vld [vmem:[#allocation4 + $0x288] sm:$0xff]  ;;  %v1687_v39 = vld [vmem:[#allocation4 + $0x80] sm:$0xff]  ;;  %v1686_v25 = vld [vmem:[#allocation4 + $0x78] sm:$0xff] }
 0x335   :  { %1891 = vmatpush1.msra.mxu1 %v1757_v51  ;;  %1821 = vmatprep.subr.mxu0 %v1692_v37  ;;  %v1751_v29 = vld [vmem:[#allocation4 + $0x280] sm:$0xff]  ;;  %v1750_v13 = vld [vmem:[#allocation4 + $0x278] sm:$0xff]  ;;  %v1685_v62 = vld [vmem:[#allocation4 + $0x70] sm:$0xff] }
 0x336   :  { %1892 = vmatprep.subr.mxu1 %v1756_v42  ;;  %1822 = vmatpush1.msra.mxu0 %v1691_v22  ;;  %v1749_v44 = vld [vmem:[#allocation4 + $0x270] sm:$0xff]  ;;  %v1684_v56 = vld [vmem:[#allocation4 + $0x68] sm:$0xff]  ;;  %v1683_v32 = vld [vmem:[#allocation4 + $0x60] sm:$0xff] }
 0x337   :  { %1893 = vmatpush1.msra.mxu1 %v1755_v21  ;;  %1823 = vmatprep.subr.mxu0 %v1690_v59  ;;  %v1748_v9 = vld [vmem:[#allocation4 + $0x268] sm:$0xff]  ;;  %v1747_v34 = vld [vmem:[#allocation4 + $0x260] sm:$0xff]  ;;  %v1682_v60 = vld [vmem:[#allocation4 + $0x58] sm:$0xff] }
 0x338   :  { %1894 = vmatprep.subr.mxu1 %v1754_v11  ;;  %1824 = vmatpush1.msra.mxu0 %v1689_v28  ;;  %v1746_v58 = vld [vmem:[#allocation4 + $0x258] sm:$0xff]  ;;  %v1681_v12 = vld [vmem:[#allocation4 + $0x50] sm:$0xff]  ;;  %v1680_v36 = vld [vmem:[#allocation4 + $0x48] sm:$0xff] }
 0x339   :  { %1895 = vmatpush1.msra.mxu1 %v1753_v40  ;;  %1825 = vmatprep.subr.mxu0 %v1688_v43  ;;  %v1745_v41 = vld [vmem:[#allocation4 + $0x250] sm:$0xff]  ;;  %v1744_v35 = vld [vmem:[#allocation4 + $0x248] sm:$0xff]  ;;  %v1679_v46 = vld [vmem:[#allocation4 + $0x40] sm:$0xff] }
 0x33a   :  { %1896 = vmatprep.subr.mxu1 %v1752_v55  ;;  %1826 = vmatpush1.msra.mxu0 %v1687_v39  ;;  %v1743_v30 = vld [vmem:[#allocation4 + $0x240] sm:$0xff]  ;;  %v1678_v38 = vld [vmem:[#allocation4 + $0x38] sm:$0xff]  ;;  %v1677_v53 = vld [vmem:[#allocation4 + $0x30] sm:$0xff] }
 0x33b   :  { %1897 = vmatpush1.msra.mxu1 %v1751_v29  ;;  %1827 = vmatprep.subr.mxu0 %v1686_v25  ;;  %v1742_v54 = vld [vmem:[#allocation4 + $0x238] sm:$0xff]  ;;  %v1741_v5 = vld [vmem:[#allocation4 + $0x230] sm:$0xff]  ;;  %v1676_v47 = vld [vmem:[#allocation4 + $0x28] sm:$0xff] }
 0x33c   :  { %1898 = vmatprep.subr.mxu1 %v1750_v13  ;;  %1828 = vmatpush1.msra.mxu0 %v1685_v62  ;;  %v1740_v16 = vld [vmem:[#allocation4 + $0x228] sm:$0xff]  ;;  %v1675_v27 = vld [vmem:[#allocation4 + $0x20] sm:$0xff]  ;;  %v1674_v24 = vld [vmem:[#allocation4 + $0x18] sm:$0xff] }
 0x33d   :  { %1899 = vmatpush1.msra.mxu1 %v1749_v44  ;;  %1829 = vmatprep.subr.mxu0 %v1684_v56  ;;  %v1739_v31 = vld [vmem:[#allocation4 + $0x220] sm:$0xff]  ;;  %v1738_v0 = vld [vmem:[#allocation4 + $0x218] sm:$0xff]  ;;  %v1673_v1 = vld [vmem:[#allocation4 + $0x10] sm:$0xff] }
 0x33e   :  { %1900 = vmatprep.subr.mxu1 %v1748_v9  ;;  %1830 = vmatpush1.msra.mxu0 %v1683_v32  ;;  %v1737_v23 = vld [vmem:[#allocation4 + $0x210] sm:$0xff]  ;;  %v1672_v6 = vld [vmem:[#allocation4 + $0x8] sm:$0xff]  ;;  %v1671_v61 = vld [vmem:[#allocation4] sm:$0xff] }
 0x33f   :  { %1901 = vmatpush1.msra.mxu1 %v1747_v34  ;;  %1831 = vmatprep.subr.mxu0 %v1682_v60  ;;  %v1736_v33 = vld [vmem:[#allocation4 + $0x208] sm:$0xff]  ;;  %v1735_v57 = vld [vmem:[#allocation4 + $0x200] sm:$0xff]  ;;  %v1734_v10 = vld [vmem:[#allocation4 + $0x1f8] sm:$0xff] }
 0x340   :  { %1902 = vmatprep.subr.mxu1 %v1746_v58  ;;  %1832 = vmatpush1.msra.mxu0 %v1681_v12  ;;  %v1798_v8 = vld [vmem:[#allocation4 + $0x3f8] sm:$0xff]  ;;  %v1733_v63 = vld [vmem:[#allocation4 + $0x1f0] sm:$0xff]  ;;  %v1732_v14 = vld [vmem:[#allocation4 + $0x1e8] sm:$0xff] }
 0x341   :  { %1903 = vmatpush1.msra.mxu1 %v1745_v41  ;;  %1833 = vmatprep.subr.mxu0 %v1680_v36  ;;  %v1797_v19 = vld [vmem:[#allocation4 + $0x3f0] sm:$0xff]  ;;  %v1796_v15 = vld [vmem:[#allocation4 + $0x3e8] sm:$0xff]  ;;  %v1731_v26 = vld [vmem:[#allocation4 + $0x1e0] sm:$0xff] }
 0x342   :  { %1904 = vmatprep.subr.mxu1 %v1744_v35  ;;  %1834 = vmatpush1.msra.mxu0 %v1679_v46  ;;  %v1795_v49 = vld [vmem:[#allocation4 + $0x3e0] sm:$0xff]  ;;  %v1730_v48 = vld [vmem:[#allocation4 + $0x1d8] sm:$0xff]  ;;  %v1729_v50 = vld [vmem:[#allocation4 + $0x1d0] sm:$0xff] }
 0x343   :  { %1905 = vmatpush1.msra.mxu1 %v1743_v30  ;;  %1835 = vmatprep.subr.mxu0 %v1678_v38  ;;  %v1794_v52 = vld [vmem:[#allocation4 + $0x3d8] sm:$0xff]  ;;  %v1793_v17 = vld [vmem:[#allocation4 + $0x3d0] sm:$0xff]  ;;  %v1728_v18 = vld [vmem:[#allocation4 + $0x1c8] sm:$0xff] }
 0x344   :  { %1906 = vmatprep.subr.mxu1 %v1742_v54  ;;  %1836 = vmatpush1.msra.mxu0 %v1677_v53  ;;  %v1792_v51 = vld [vmem:[#allocation4 + $0x3c8] sm:$0xff]  ;;  %v1727_v37 = vld [vmem:[#allocation4 + $0x1c0] sm:$0xff]  ;;  %v1726_v22 = vld [vmem:[#allocation4 + $0x1b8] sm:$0xff] }
 0x345   :  { %1907 = vmatpush1.msra.mxu1 %v1741_v5  ;;  %1837 = vmatprep.subr.mxu0 %v1676_v47  ;;  %v1791_v42 = vld [vmem:[#allocation4 + $0x3c0] sm:$0xff]  ;;  %v1790_v21 = vld [vmem:[#allocation4 + $0x3b8] sm:$0xff]  ;;  %v1725_v59 = vld [vmem:[#allocation4 + $0x1b0] sm:$0xff] }
 0x346   :  { %1908 = vmatprep.subr.mxu1 %v1740_v16  ;;  %1838 = vmatpush1.msra.mxu0 %v1675_v27  ;;  %v1789_v11 = vld [vmem:[#allocation4 + $0x3b0] sm:$0xff]  ;;  %v1724_v28 = vld [vmem:[#allocation4 + $0x1a8] sm:$0xff]  ;;  %v1723_v43 = vld [vmem:[#allocation4 + $0x1a0] sm:$0xff] }
 0x347   :  { %1909 = vmatpush1.msra.mxu1 %v1739_v31  ;;  %1839 = vmatprep.subr.mxu0 %v1674_v24  ;;  %v1788_v40 = vld [vmem:[#allocation4 + $0x3a8] sm:$0xff]  ;;  %v1787_v55 = vld [vmem:[#allocation4 + $0x3a0] sm:$0xff]  ;;  %v1722_v39 = vld [vmem:[#allocation4 + $0x198] sm:$0xff] }
 0x348   :  { %1910 = vmatprep.subr.mxu1 %v1738_v0  ;;  %1840 = vmatpush1.msra.mxu0 %v1673_v1  ;;  %v1786_v29 = vld [vmem:[#allocation4 + $0x398] sm:$0xff]  ;;  %v1721_v25 = vld [vmem:[#allocation4 + $0x190] sm:$0xff]  ;;  %v1720_v62 = vld [vmem:[#allocation4 + $0x188] sm:$0xff] }
 0x349   :  { %1911 = vmatpush1.msra.mxu1 %v1737_v23  ;;  %1841 = vmatprep.subr.mxu0 %v1672_v6  ;;  %v1785_v13 = vld [vmem:[#allocation4 + $0x390] sm:$0xff]  ;;  %v1784_v44 = vld [vmem:[#allocation4 + $0x388] sm:$0xff]  ;;  %v1719_v56 = vld [vmem:[#allocation4 + $0x180] sm:$0xff] }
 0x34a   :  { %1912 = vmatprep.subr.mxu1 %v1736_v33  ;;  %1842 = vmatpush1.msra.mxu0 %v1671_v61  ;;  %v1783_v9 = vld [vmem:[#allocation4 + $0x380] sm:$0xff]  ;;  %v1718_v32 = vld [vmem:[#allocation4 + $0x178] sm:$0xff]  ;;  %v1717_v60 = vld [vmem:[#allocation4 + $0x170] sm:$0xff] }
 0x34b   :  { %1913 = vmatpush1.msra.mxu1 %v1735_v57  ;;  %1843 = vmatprep.subr.mxu0 %v1734_v10  ;;  %v1782_v34 = vld [vmem:[#allocation4 + $0x378] sm:$0xff]  ;;  %v1781_v58 = vld [vmem:[#allocation4 + $0x370] sm:$0xff]  ;;  %v1716_v12 = vld [vmem:[#allocation4 + $0x168] sm:$0xff] }
 0x34c   :  { %1914 = vmatprep.subr.mxu1 %v1798_v8  ;;  %1844 = vmatpush2.msra.mxu0 %v1733_v63  ;;  %v1780_v41 = vld [vmem:[#allocation4 + $0x368] sm:$0xff]  ;;  %v1715_v36 = vld [vmem:[#allocation4 + $0x160] sm:$0xff]  ;;  %v1714_v46 = vld [vmem:[#allocation4 + $0x158] sm:$0xff] }
 0x34d   :  { %1915 = vmatpush2.msra.mxu1 %v1797_v19  ;;  %1845 = vmatprep.subr.mxu0 %v1732_v14  ;;  %v1779_v35 = vld [vmem:[#allocation4 + $0x360] sm:$0xff]  ;;  %v1778_v30 = vld [vmem:[#allocation4 + $0x358] sm:$0xff]  ;;  %v1713_v38 = vld [vmem:[#allocation4 + $0x150] sm:$0xff] }
 0x34e   :  { %1916 = vmatprep.subr.mxu1 %v1796_v15  ;;  %1846 = vmatpush2.msra.mxu0 %v1731_v26  ;;  %v1777_v54 = vld [vmem:[#allocation4 + $0x350] sm:$0xff]  ;;  %v1712_v53 = vld [vmem:[#allocation4 + $0x148] sm:$0xff]  ;;  %v1711_v47 = vld [vmem:[#allocation4 + $0x140] sm:$0xff] }
 0x34f   :  { %1917 = vmatpush2.msra.mxu1 %v1795_v49  ;;  %1847 = vmatprep.subr.mxu0 %v1730_v48  ;;  %v1776_v5 = vld [vmem:[#allocation4 + $0x348] sm:$0xff]  ;;  %v1775_v16 = vld [vmem:[#allocation4 + $0x340] sm:$0xff]  ;;  %v1710_v27 = vld [vmem:[#allocation4 + $0x138] sm:$0xff] }
 0x350   :  { %1918 = vmatprep.subr.mxu1 %v1794_v52  ;;  %1848 = vmatpush2.msra.mxu0 %v1729_v50  ;;  %v1774_v31 = vld [vmem:[#allocation4 + $0x338] sm:$0xff]  ;;  %v1709_v24 = vld [vmem:[#allocation4 + $0x130] sm:$0xff]  ;;  %v1708_v1 = vld [vmem:[#allocation4 + $0x128] sm:$0xff] }
 0x351   :  { %1919 = vmatpush2.msra.mxu1 %v1793_v17  ;;  %1849 = vmatprep.subr.mxu0 %v1728_v18  ;;  %v1773_v0 = vld [vmem:[#allocation4 + $0x330] sm:$0xff]  ;;  %v1772_v23 = vld [vmem:[#allocation4 + $0x328] sm:$0xff]  ;;  %v1707_v6 = vld [vmem:[#allocation4 + $0x120] sm:$0xff] }
 0x352   :  { %1920 = vmatprep.subr.mxu1 %v1792_v51  ;;  %1850 = vmatpush2.msra.mxu0 %v1727_v37  ;;  %v1771_v33 = vld [vmem:[#allocation4 + $0x320] sm:$0xff]  ;;  %v1706_v61 = vld [vmem:[#allocation4 + $0x118] sm:$0xff]  ;;  %v1705_v10 = vld [vmem:[#allocation4 + $0x110] sm:$0xff] }
 0x353   :  { %1921 = vmatpush2.msra.mxu1 %v1791_v42  ;;  %1851 = vmatprep.subr.mxu0 %v1726_v22  ;;  %v1770_v57 = vld [vmem:[#allocation4 + $0x318] sm:$0xff]  ;;  %v1769_v8 = vld [vmem:[#allocation4 + $0x310] sm:$0xff]  ;;  %v1704_v63 = vld [vmem:[#allocation4 + $0x108] sm:$0xff] }
 0x354   :  { %1922 = vmatprep.subr.mxu1 %v1790_v21  ;;  %1852 = vmatpush2.msra.mxu0 %v1725_v59  ;;  %v1768_v19 = vld [vmem:[#allocation4 + $0x308] sm:$0xff]  ;;  %v1703_v14 = vld [vmem:[#allocation4 + $0x100] sm:$0xff] }
 0x355   :  { %1923 = vmatpush2.msra.mxu1 %v1789_v11  ;;  %1853 = vmatprep.subr.mxu0 %v1724_v28  ;;  %v1767_v15 = vld [vmem:[#allocation4 + $0x300] sm:$0xff] }
 0x356   :  { %1924 = vmatprep.subr.mxu1 %v1788_v40  ;;  %1854 = vmatpush2.msra.mxu0 %v1723_v43  ;;  %v1799_v26 = vld [vmem:[#allocation5] sm:$0x3] }
 0x357   :  { %1925 = vmatpush2.msra.mxu1 %v1787_v55  ;;  %1855 = vmatprep.subr.mxu0 %v1722_v39  ;;  %v1804_v49 = vrot.slane %v1799_v26, %v2778_v3  ;;  %v1808_v48 = vrot.slane %v1799_v26, %v2775_v2 }
 0x358   :  { %1926 = vmatprep.subr.mxu1 %v1786_v29  ;;  %1856 = vmatpush2.msra.mxu0 %v1721_v25 }
 0x359   :  { %1927 = vmatpush2.msra.mxu1 %v1785_v13  ;;  %1857 = vmatprep.subr.mxu0 %v1720_v62 }
 0x35a   :  { %1928 = vmatprep.subr.mxu1 %v1784_v44  ;;  %1858 = vmatpush2.msra.mxu0 %v1719_v56 }
 0x35b   :  { %1929 = vmatpush2.msra.mxu1 %v1783_v9  ;;  %1859 = vmatprep.subr.mxu0 %v1718_v32 }
 0x35c   :  { %1930 = vmatprep.subr.mxu1 %v1782_v34  ;;  %1860 = vmatpush2.msra.mxu0 %v1717_v60 }
 0x35d   :  { %1931 = vmatpush2.msra.mxu1 %v1781_v58  ;;  %1861 = vmatprep.subr.mxu0 %v1716_v12 }
 0x35e   :  { %1932 = vmatprep.subr.mxu1 %v1780_v41  ;;  %1862 = vmatpush2.msra.mxu0 %v1715_v36 }
 0x35f   :  { %1933 = vmatpush2.msra.mxu1 %v1779_v35  ;;  %1863 = vmatprep.subr.mxu0 %v1714_v46 }
 0x360   :  { %1934 = vmatprep.subr.mxu1 %v1778_v30  ;;  %1864 = vmatpush2.msra.mxu0 %v1713_v38 }
 0x361   :  { %1935 = vmatpush2.msra.mxu1 %v1777_v54  ;;  %1865 = vmatprep.subr.mxu0 %v1712_v53 }
 0x362   :  { %1936 = vmatprep.subr.mxu1 %v1776_v5  ;;  %1866 = vmatpush2.msra.mxu0 %v1711_v47 }
 0x363   :  { %1937 = vmatpush2.msra.mxu1 %v1775_v16  ;;  %1867 = vmatprep.subr.mxu0 %v1710_v27 }
 0x364   :  { %1938 = vmatprep.subr.mxu1 %v1774_v31  ;;  %1868 = vmatpush2.msra.mxu0 %v1709_v24 }
 0x365   :  { %1939 = vmatpush2.msra.mxu1 %v1773_v0  ;;  %1869 = vmatprep.subr.mxu0 %v1708_v1 }
 0x366   :  { %1940 = vmatprep.subr.mxu1 %v1772_v23  ;;  %1870 = vmatpush2.msra.mxu0 %v1707_v6 }
 0x367   :  { %1941 = vmatpush2.msra.mxu1 %v1771_v33  ;;  %1871 = vmatprep.subr.mxu0 %v1706_v61 }
 0x368   :  { %1942 = vmatprep.subr.mxu1 %v1770_v57  ;;  %1872 = vmatpush2.msra.mxu0 %v1705_v10 }
 0x369   :  { %1943 = vmatpush2.msra.mxu1 %v1769_v8  ;;  %1873 = vmatprep.subr.mxu0 %v1704_v63 }
 0x36a   :  { %1944 = vmatprep.subr.mxu1 %v1768_v19  ;;  %1874 = vmatpush2.msra.mxu0 %v1703_v14 }
 0x36b   :  { %1945 = vmatpush2.msra.mxu1 %v1767_v15  ;;  %1876 = vmatmul.mubr.f32.vlgmr.msra.gmra.mxu0 %v1660_v45 }
 0x36c   :  { %1947 = vmatmul.mubr.f32.vlgmr.msra.gmra.mxu1 %v1662_v20 }
 0x42b   :  { %v1877_v52 = vpop.f32.mrf.mxu0 }
 0x42c   :  { %v1948_v50 = vpop.f32.mrf.mxu1  ;;  %v1878_v17 = vadd.f32 %v1877_v52, %v1804_v49 }
 0x42d   :  { %v1879_v18 = vpop.f32.mrf.mxu0 }
 0x42e   :  { %v3380_v51 = vadd.f32 %v1948_v50, %v1878_v17  ;;  %v1880_v37 = vadd.f32 %v1879_v18, %v1808_v48  ;;  %v1950_v42 = vpop.f32.mrf.mxu1 }
 0x430   :  { %v1953_v22 = vmax.f32 %v3380_v51, 0.0  ;;  %v1951_v7 = vadd.f32 %v1950_v42, %v1880_v37 }
 0x432   :  { %v1954_v45 = vmax.f32 %v1951_v7, 0.0 }
 0x433   :  { %2491 = dma.done.wait [#allocation8 + $0x4], 4096 }
 0x434   :  { %2492 = vsyncadd [#allocation8 + $0x4], 4294963200 }
 0x435   :  { %2493 = dma.done.wait [#allocation8 + $0x5], 16 }
 0x436   :  { %2494 = vsyncadd [#allocation8 + $0x5], 4294967280  ;;  %2064 = vmatprep.mubr.f32.mxu0 %v1954_v45  ;;  %v1992_v3 = vld [vmem:[#allocation6 + $0xf8] sm:$0xff]  ;;  %v1991_v2 = vld [vmem:[#allocation6 + $0xf0] sm:$0xff]  ;;  %vm2070_vm10 = vcmask 402432  }
 0x437   :  { %v1976_v4 = vld [vmem:[#allocation6 + $0x78] sm:$0xff]  ;;  %2183 = vmatprep.subr.mxu0 %v1992_v3  ;;  %v1975_v20 = vld [vmem:[#allocation6 + $0x70] sm:$0xff]  ;;  %v1990_v21 = vld [vmem:[#allocation6 + $0xe8] sm:$0xff] }
 0x438   :  { %2184 = vmatpush3.msra.mxu0 %v1976_v4  ;;  %v1974_v59 = vld [vmem:[#allocation6 + $0x68] sm:$0xff]  ;;  %v1989_v11 = vld [vmem:[#allocation6 + $0xe0] sm:$0xff]  ;;  %v1988_v40 = vld [vmem:[#allocation6 + $0xd8] sm:$0xff] }
 0x439   :  { %2185 = vmatprep.subr.mxu0 %v1991_v2  ;;  %v1973_v28 = vld [vmem:[#allocation6 + $0x60] sm:$0xff]  ;;  %v1972_v43 = vld [vmem:[#allocation6 + $0x58] sm:$0xff]  ;;  %v1987_v55 = vld [vmem:[#allocation6 + $0xd0] sm:$0xff] }
 0x43a   :  { %2186 = vmatpush3.msra.mxu0 %v1975_v20  ;;  %v1971_v39 = vld [vmem:[#allocation6 + $0x50] sm:$0xff]  ;;  %v1986_v29 = vld [vmem:[#allocation6 + $0xc8] sm:$0xff]  ;;  %v1985_v13 = vld [vmem:[#allocation6 + $0xc0] sm:$0xff] }
 0x43b   :  { %2187 = vmatprep.subr.mxu0 %v1990_v21  ;;  %v1970_v25 = vld [vmem:[#allocation6 + $0x48] sm:$0xff]  ;;  %v1969_v62 = vld [vmem:[#allocation6 + $0x40] sm:$0xff]  ;;  %v1984_v44 = vld [vmem:[#allocation6 + $0xb8] sm:$0xff] }
 0x43c   :  { %2188 = vmatpush3.msra.mxu0 %v1974_v59  ;;  %v1968_v56 = vld [vmem:[#allocation6 + $0x38] sm:$0xff]  ;;  %v1983_v9 = vld [vmem:[#allocation6 + $0xb0] sm:$0xff]  ;;  %v1982_v34 = vld [vmem:[#allocation6 + $0xa8] sm:$0xff] }
 0x43d   :  { %2189 = vmatprep.subr.mxu0 %v1989_v11  ;;  %v1967_v32 = vld [vmem:[#allocation6 + $0x30] sm:$0xff]  ;;  %v1966_v60 = vld [vmem:[#allocation6 + $0x28] sm:$0xff]  ;;  %v1981_v58 = vld [vmem:[#allocation6 + $0xa0] sm:$0xff] }
 0x43e   :  { %2190 = vmatpush3.msra.mxu0 %v1973_v28  ;;  %v1965_v12 = vld [vmem:[#allocation6 + $0x20] sm:$0xff]  ;;  %v1980_v41 = vld [vmem:[#allocation6 + $0x98] sm:$0xff]  ;;  %v1979_v35 = vld [vmem:[#allocation6 + $0x90] sm:$0xff] }
 0x43f   :  { %2191 = vmatprep.subr.mxu0 %v1988_v40  ;;  %v1964_v36 = vld [vmem:[#allocation6 + $0x18] sm:$0xff]  ;;  %v1963_v46 = vld [vmem:[#allocation6 + $0x10] sm:$0xff]  ;;  %v1978_v30 = vld [vmem:[#allocation6 + $0x88] sm:$0xff] }
 0x440   :  { %2192 = vmatpush3.msra.mxu0 %v1972_v43  ;;  %v1962_v38 = vld [vmem:[#allocation6 + $0x8] sm:$0xff]  ;;  %v1977_v54 = vld [vmem:[#allocation6 + $0x80] sm:$0xff] }
 0x441   :  { %2193 = vmatprep.subr.mxu0 %v1987_v55  ;;  %v1961_v53 = vld [vmem:[#allocation6] sm:$0xff] }
 0x442   :  { %2194 = vmatpush3.msra.mxu0 %v1971_v39  ;;  %v2176_v47 = vld [vmem:[#allocation7] ss:$0 sm:$0xff] }
 0x443   :  { %2195 = vmatprep.subr.mxu0 %v1986_v29 }
 0x444   :  { %2196 = vmatpush3.msra.mxu0 %v1970_v25 }
 0x445   :  { %2197 = vmatprep.subr.mxu0 %v1985_v13 }
 0x446   :  { %2198 = vmatpush3.msra.mxu0 %v1969_v62 }
 0x447   :  { %2199 = vmatprep.subr.mxu0 %v1984_v44 }
 0x448   :  { %2200 = vmatpush3.msra.mxu0 %v1968_v56 }
 0x449   :  { %2201 = vmatprep.subr.mxu0 %v1983_v9 }
 0x44a   :  { %2202 = vmatpush3.msra.mxu0 %v1967_v32 }
 0x44b   :  { %2203 = vmatprep.subr.mxu0 %v1982_v34 }
 0x44c   :  { %2204 = vmatpush3.msra.mxu0 %v1966_v60 }
 0x44d   :  { %2205 = vmatprep.subr.mxu0 %v1981_v58 }
 0x44e   :  { %2206 = vmatpush3.msra.mxu0 %v1965_v12 }
 0x44f   :  { %2207 = vmatprep.subr.mxu0 %v1980_v41 }
 0x450   :  { %2208 = vmatpush3.msra.mxu0 %v1964_v36 }
 0x451   :  { %2209 = vmatprep.subr.mxu0 %v1979_v35 }
 0x452   :  { %2210 = vmatpush3.msra.mxu0 %v1963_v46 }
 0x453   :  { %2211 = vmatprep.subr.mxu0 %v1978_v30 }
 0x454   :  { %2212 = vmatpush3.msra.mxu0 %v1962_v38 }
 0x455   :  { %2213 = vmatprep.subr.mxu0 %v1977_v54 }
 0x456   :  { %2214 = vmatpush3.msra.mxu0 %v1961_v53 }
 0x457   :  { %2065 = vmatmul.mubr.f32.vlgmr.msra.gmra.mxu0 %v1953_v22 }
 0x517   :  { %v2215_v5 = vpop.f32.mrf.mxu0 }
 0x519   :  { %v2216_v16 = vpop.f32.mrf.mxu0 }
 0x51a   :  { %v2217_v27 = vadd.f32 %v2216_v16, %v2215_v5 }
 0x51c   :  { %v2067_v31 = vadd.f32 %v2217_v27, %v2176_v47 }
 0x51e   :  { %2071 = vst.msk [vmem:[%s3399_s11] sm:$0x3] %vm2070_vm10, %v2067_v31 }
 0x51f   :  { %2080 = vsyncpa [#allocation10], 1 }
 0x520   :  { %2081 = vsyncpa [#allocation12], 1 }
 0x521   :  { %2082 = vsyncmov [#allocation8] }
 0x524   :  { %s2083_s13 = vpop.sfrf %2082 }
 0x525   :  { %p2177_p11 = scmp.ne.s32.totalorder %s2083_s13, 0 }
 0x527   :  { %2087 = shalt.err (%p2177_p11)  }
 0x528   :  { %2089 = vsyncmov [#allocation8 + $0x1] }
 0x52b   :  { %s2090_s14 = vpop.sfrf %2089 }
 0x52c   :  { %p2178_p12 = scmp.ne.s32.totalorder %s2090_s14, 0 }
 0x52e   :  { %2094 = shalt.err (%p2178_p12)  }
 0x52f   :  { %2096 = vsyncmov [#allocation8 + $0x2] }
 0x532   :  { %s2097_s7 = vpop.sfrf %2096 }
 0x533   :  { %p2179_p13 = scmp.ne.s32.totalorder %s2097_s7, 0 }
 0x535   :  { %2101 = shalt.err (%p2179_p13)  }
 0x536   :  { %2103 = vsyncmov [#allocation8 + $0x3] }
 0x539   :  { %s2104_s15 = vpop.sfrf %2103 }
 0x53a   :  { %p2180_p0 = scmp.ne.s32.totalorder %s2104_s15, 0 }
 0x53c   :  { %2108 = shalt.err (%p2180_p0)  }
 0x53d   :  { %2110 = vsyncmov [#allocation8 + $0x4] }
 0x540   :  { %s2111_s11 = vpop.sfrf %2110 }
 0x541   :  { %p2181_p1 = scmp.ne.s32.totalorder %s2111_s11, 0 }
 0x543   :  { %2115 = shalt.err (%p2181_p1)  }
 0x544   :  { %2117 = vsyncmov [#allocation8 + $0x5] }
 0x547   :  { %s2118_s10 = vpop.sfrf %2117 }
 0x548   :  { %p2182_p2 = scmp.ne.s32.totalorder %s2118_s10, 0 }
 0x54a   :  { %2122 = shalt.err (%p2182_p2)  }

</bundles_post_ra>
